<compile_context>
chip_gen: v6e
topology: v6e:2x2x1
jax: 0.10.0
libtpu: 0.0.40
codegen_flags: <defaults>
</compile_context>

<pallas_src>
import numpy as np
import jax
import jax.numpy as jnp
from jax import lax
from jax.experimental import pallas as pl
from jax.experimental.pallas import tpu as pltpu


# ----------------------------------------------------------------------------
# Fused kernel: stacked GRU layers + Linear head, everything in VMEM.
# ----------------------------------------------------------------------------
def make_reg_gru_kernel(num_layers, S, B, H, out_dim):
    def kernel(*refs):
        # refs = [x2d, (w_ih, w_hh, b_ih, b_hh) * num_layers, w_reg, b_reg,
        #         out, gi_scratch, seq_scratch]
        x_ref = refs[0]                               # (S*B, D_in)
        layer_refs = refs[1:1 + 4 * num_layers]
        w_reg_ref = refs[1 + 4 * num_layers]          # (H, out_dim)
        b_reg_ref = refs[2 + 4 * num_layers]          # (1, out_dim)
        out_ref = refs[3 + 4 * num_layers]            # (S*B, out_dim)
        gi_scratch = refs[4 + 4 * num_layers]         # VMEM (S*B, 3H) f32
        seq_scratch = refs[5 + 4 * num_layers]        # VMEM (S*B, H)  f32

        for layer in range(num_layers):               # static unroll over layers
            wih = layer_refs[4 * layer][...]          # (D_in, 3H)
            whh = layer_refs[4 * layer + 1][...]      # (H, 3H)
            bih = layer_refs[4 * layer + 2][...]      # (1, 3H)
            bhh = layer_refs[4 * layer + 3][...]      # (1, 3H)

            # Whole-sequence input slab for this layer (lane/sublane dense 2-D).
            if layer == 0:
                layer_in = x_ref[...]                 # (S*B, D_in)
            else:
                layer_in = seq_scratch[...]           # (S*B, H) from prev layer

            # ---- Hoisted input-side gate matmul (off the serial chain) -----
            # One dense (S*B, D_in) @ (D_in, 3H) matmul replaces S tiny ones
            # inside the recurrence.  Fold b_ih (all gates) plus the r/z part
            # of b_hh in here; only b_hn must stay inside r * (gh_n + b_hn).
            gi_scratch[...] = (
                jnp.dot(layer_in, wih, preferred_element_type=jnp.float32)
                + bih)
            gi_scratch[:, :2 * H] = gi_scratch[:, :2 * H] + bhh[:, :2 * H]

            # Hoist the b_hn broadcast above the (unrolled) time loop.
            bhn = jnp.broadcast_to(bhh[:, 2 * H:3 * H], (B, H))

            def step(t, h_prev):
                row = pl.multiple_of(t * B, B)
                gi = gi_scratch[pl.ds(row, B), :]     # (B, 3H), precomputed
                # Single serial matmul per step (the recurrence-critical one).
                gh = jnp.dot(h_prev, whh, preferred_element_type=jnp.float32)
                # Fused r/z sigmoid over the contiguous [0, 2H) lane range.
                act = jax.nn.sigmoid(gi[:, :2 * H] + gh[:, :2 * H])
                r = act[:, :H]
                z = act[:, H:2 * H]
                # torch: n = tanh(W_in x + b_in + r * (W_hn h + b_hn))
                n = jnp.tanh(gi[:, 2 * H:] + r * (gh[:, 2 * H:] + bhn))
                # torch: h = (1 - z) * n + z * h_prev
                h_new = (1.0 - z) * n + z * h_prev
                # Every layer writes its hidden sequence to the scratch slab;
                # the next layer (or the head) consumes it in one dense read.
                seq_scratch[pl.ds(row, B), :] = h_new
                return h_new

            h0 = jnp.zeros((B, H), jnp.float32)
            lax.fori_loop(0, S, step, h0, unroll=True)

        # ---- Regression head: one dense matmul + a single output store -----
        hs = seq_scratch[...]                         # (S*B, H)
        y = jnp.dot(hs, w_reg_ref[...],
                    preferred_element_type=jnp.float32) + b_reg_ref[...]
        out_ref[...] = y.astype(out_ref.dtype)

    return kernel


# ----------------------------------------------------------------------------
# Wrapper: one pallas_call for the whole RegGRU forward.
# ----------------------------------------------------------------------------
def reg_gru_forward(x, params):
    S, B, D_in = x.shape
    num_layers = len(params["gru"])
    H = params["gru"][0][1].shape[0]                  # w_hh: (H, 3H)
    out_dim = params["w_reg"].shape[-1]

    flat_weights = []
    for (w_ih, w_hh, b_ih, b_hh) in params["gru"]:
        flat_weights += [w_ih, w_hh, b_ih, b_hh]

    kernel = make_reg_gru_kernel(num_layers, S, B, H, out_dim)
    out2d = pl.pallas_call(
        kernel,
        out_shape=jax.ShapeDtypeStruct((S * B, out_dim), jnp.float32),
        scratch_shapes=[pltpu.VMEM((S * B, 3 * H), jnp.float32),   # GI slab
                        pltpu.VMEM((S * B, H), jnp.float32)],      # hidden seq
    )(x.reshape(S * B, D_in),
      *flat_weights,
      params["w_reg"],
      params["b_reg"].reshape(1, out_dim))
    return out2d.reshape(S, B, out_dim)


# ----------------------------------------------------------------------------
# Parameter init (deterministic, PyTorch-style U(-1/sqrt(H), 1/sqrt(H))),
# stored gate-stacked: w_ih (D_in, 3H), w_hh (H, 3H), biases (1, 3H),
# gate order [r, z, n] (matches torch.nn.GRU chunking).
# ----------------------------------------------------------------------------
def init_params(key, inp_dim, out_dim, mod_dim, mid_layers):
    H = mod_dim
    k = 1.0 / np.sqrt(H)
    gru = []
    for layer in range(mid_layers):
        d_in = inp_dim if layer == 0 else H
        key, k1, k2, k3, k4 = jax.random.split(key, 5)
        w_ih = jax.random.uniform(k1, (d_in, 3 * H), jnp.float32, -k, k)
        w_hh = jax.random.uniform(k2, (H, 3 * H), jnp.float32, -k, k)
        b_ih = jax.random.uniform(k3, (1, 3 * H), jnp.float32, -k, k)
        b_hh = jax.random.uniform(k4, (1, 3 * H), jnp.float32, -k, k)
        gru.append((w_ih, w_hh, b_ih, b_hh))
    key, k5, k6 = jax.random.split(key, 3)
    w_reg = jax.random.uniform(k5, (H, out_dim), jnp.float32, -k, k)
    b_reg = jax.random.uniform(k6, (out_dim,), jnp.float32, -k, k)
    return {"gru": gru, "w_reg": w_reg, "b_reg": b_reg}


# ----------------------------------------------------------------------------
# Pure-JAX reference (correctness verification only).
# ----------------------------------------------------------------------------
def reference_forward(x, params):
    h_seq = x
    for (w_ih, w_hh, b_ih, b_hh) in params["gru"]:
        B = h_seq.shape[1]
        H = w_hh.shape[0]

        def step(h_prev, x_t):
            gi = x_t @ w_ih + b_ih
            gh = h_prev @ w_hh + b_hh
            r = jax.nn.sigmoid(gi[:, 0:H] + gh[:, 0:H])
            z = jax.nn.sigmoid(gi[:, H:2 * H] + gh[:, H:2 * H])
            n = jnp.tanh(gi[:, 2 * H:3 * H] + r * gh[:, 2 * H:3 * H])
            h_new = (1.0 - z) * n + z * h_prev
            return h_new, h_new

        h0 = jnp.zeros((B, H), jnp.float32)
        _, ys = jax.lax.scan(step, h0, h_seq)
        h_seq = ys
    S, B, H = h_seq.shape
    out = h_seq.reshape(S * B, H) @ params["w_reg"] + params["b_reg"].reshape(1, -1)
    return out.reshape(S, B, -1)


if __name__ == "__main__":
    # RegGRU(inp_dim=8, out_dim=4, mod_dim=32, mid_layers=2)
    inp_dim, out_dim, mod_dim, mid_layers = 8, 4, 32, 2
    seq_len, batch = 8, 2

    key = jax.random.PRNGKey(0)
    key, kx = jax.random.split(key)
    x = jax.random.normal(kx, (seq_len, batch, inp_dim), jnp.float32)

    params = init_params(key, inp_dim, out_dim, mod_dim, mid_layers)

    y = reg_gru_forward(x, params)
    y = jax.block_until_ready(y)

    y_ref = reference_forward(x, params)
    assert y.shape == (seq_len, batch, out_dim)
    np.testing.assert_allclose(np.asarray(y), np.asarray(y_ref), rtol=1e-5, atol=1e-5)

    print("KERNEL_OK")
</pallas_src>

<mosaic_0001>
module attributes {stable_mosaic.version = 11 : i64} {
  func.func @kernel(%arg0: memref<16x8xf32, #tpu.memory_space<vmem>>, %arg1: memref<8x96xf32, #tpu.memory_space<vmem>>, %arg2: memref<32x96xf32, #tpu.memory_space<vmem>>, %arg3: memref<1x96xf32, #tpu.memory_space<vmem>>, %arg4: memref<1x96xf32, #tpu.memory_space<vmem>>, %arg5: memref<32x96xf32, #tpu.memory_space<vmem>>, %arg6: memref<32x96xf32, #tpu.memory_space<vmem>>, %arg7: memref<1x96xf32, #tpu.memory_space<vmem>>, %arg8: memref<1x96xf32, #tpu.memory_space<vmem>>, %arg9: memref<32x4xf32, #tpu.memory_space<vmem>>, %arg10: memref<1x4xf32, #tpu.memory_space<vmem>>, %arg11: memref<16x4xf32, #tpu.memory_space<vmem>>, %arg12: memref<16x96xf32, #tpu.memory_space<vmem>>, %arg13: memref<16x32xf32, #tpu.memory_space<vmem>>) attributes {dimension_semantics = [], scalar_prefetch = 0 : i64, scratch_operands = 2 : i64, tpu.core_type = #tpu.core_type<tc>} {
    %c0 = arith.constant 0 : index
    %c0_0 = arith.constant 0 : index
    %0 = vector.load %arg1[%c0, %c0_0] : memref<8x96xf32, #tpu.memory_space<vmem>>, vector<8x96xf32>
    %c0_1 = arith.constant 0 : index
    %c0_2 = arith.constant 0 : index
    %1 = vector.load %arg2[%c0_1, %c0_2] : memref<32x96xf32, #tpu.memory_space<vmem>>, vector<32x96xf32>
    %c0_3 = arith.constant 0 : index
    %c0_4 = arith.constant 0 : index
    %2 = vector.load %arg3[%c0_3, %c0_4] : memref<1x96xf32, #tpu.memory_space<vmem>>, vector<1x96xf32>
    %c0_5 = arith.constant 0 : index
    %c0_6 = arith.constant 0 : index
    %3 = vector.load %arg4[%c0_5, %c0_6] : memref<1x96xf32, #tpu.memory_space<vmem>>, vector<1x96xf32>
    %c0_7 = arith.constant 0 : index
    %c0_8 = arith.constant 0 : index
    %4 = vector.load %arg0[%c0_7, %c0_8] : memref<16x8xf32, #tpu.memory_space<vmem>>, vector<16x8xf32>
    %cst = arith.constant dense<0.000000e+00> : vector<16x96xf32>
    %5 = tpu.matmul %4, %0, %cst {dimension_numbers = #tpu.dot_dimension_numbers<[1], [0], [0], [1], [0, 0, 1, 1], [], []>} : vector<16x8xf32>, vector<8x96xf32>, vector<16x96xf32> -> vector<16x96xf32>
    %6 = vector.broadcast %2 : vector<1x96xf32> to vector<16x96xf32>
    %7 = arith.addf %5, %6 : vector<16x96xf32>
    %c0_9 = arith.constant 0 : index
    %c0_10 = arith.constant 0 : index
    %8 = vector.load %arg12[%c0_9, %c0_10] : memref<16x96xf32, #tpu.memory_space<vmem>>, vector<16x96xf32>
    tpu.vector_store %arg12[%c0_9, %c0_10], %7 {strides = array<i32>} : memref<16x96xf32, #tpu.memory_space<vmem>>, vector<16x96xf32>,
    %c0_11 = arith.constant 0 : index
    %c0_12 = arith.constant 0 : index
    %9 = vector.load %arg12[%c0_11, %c0_12] : memref<16x96xf32, #tpu.memory_space<vmem>>, vector<16x64xf32>
    %10 = vector.extract_strided_slice %3 {offsets = [0, 0], sizes = [1, 64], strides = [1, 1]} : vector<1x96xf32> to vector<1x64xf32>
    %11 = vector.broadcast %10 : vector<1x64xf32> to vector<16x64xf32>
    %12 = arith.addf %9, %11 : vector<16x64xf32>
    %c0_13 = arith.constant 0 : index
    %c0_14 = arith.constant 0 : index
    %13 = vector.load %arg12[%c0_13, %c0_14] : memref<16x96xf32, #tpu.memory_space<vmem>>, vector<16x64xf32>
    tpu.vector_store %arg12[%c0_13, %c0_14], %12 {strides = array<i32>} : memref<16x96xf32, #tpu.memory_space<vmem>>, vector<16x64xf32>,
    %14 = vector.extract_strided_slice %3 {offsets = [0, 64], sizes = [1, 32], strides = [1, 1]} : vector<1x96xf32> to vector<1x32xf32>
    %15 = vector.shape_cast %14 : vector<1x32xf32> to vector<1x32xf32>
    %16 = vector.broadcast %15 : vector<1x32xf32> to vector<2x32xf32>
    %cst_15 = arith.constant 0.000000e+00 : f32
    %17 = vector.broadcast %cst_15 : f32 to vector<2x32xf32>
    %c0_i32 = arith.constant 0 : i32
    %c2_i32 = arith.constant 2 : i32
    %18 = arith.muli %c0_i32, %c2_i32 : i32
    %19 = tpu.assume_multiple %18, 2 : i32
    %20 = arith.index_cast %19 : i32 to index
    %c0_16 = arith.constant 0 : index
    %21 = vector.load %arg12[%20, %c0_16] : memref<16x96xf32, #tpu.memory_space<vmem>>, vector<2x96xf32>
    %cst_17 = arith.constant dense<0.000000e+00> : vector<2x96xf32>
    %22 = tpu.matmul %17, %1, %cst_17 {dimension_numbers = #tpu.dot_dimension_numbers<[1], [0], [0], [1], [0, 0, 1, 1], [], []>} : vector<2x32xf32>, vector<32x96xf32>, vector<2x96xf32> -> vector<2x96xf32>
    %23 = vector.extract_strided_slice %21 {offsets = [0, 0], sizes = [2, 64], strides = [1, 1]} : vector<2x96xf32> to vector<2x64xf32>
    %24 = vector.extract_strided_slice %22 {offsets = [0, 0], sizes = [2, 64], strides = [1, 1]} : vector<2x96xf32> to vector<2x64xf32>
    %25 = arith.addf %23, %24 : vector<2x64xf32>
    %26 = arith.negf %25 : vector<2x64xf32>
    %27 = math.exp %26 : vector<2x64xf32>
    %cst_18 = arith.constant 1.000000e+00 : f32
    %28 = vector.broadcast %cst_18 : f32 to vector<2x64xf32>
    %29 = arith.addf %28, %27 : vector<2x64xf32>
    %30 = arith.divf %28, %29 : vector<2x64xf32>
    %31 = vector.extract_strided_slice %30 {offsets = [0, 0], sizes = [2, 32], strides = [1, 1]} : vector<2x64xf32> to vector<2x32xf32>
    %32 = vector.extract_strided_slice %30 {offsets = [0, 32], sizes = [2, 32], strides = [1, 1]} : vector<2x64xf32> to vector<2x32xf32>
    %33 = vector.extract_strided_slice %21 {offsets = [0, 64], sizes = [2, 32], strides = [1, 1]} : vector<2x96xf32> to vector<2x32xf32>
    %34 = vector.extract_strided_slice %22 {offsets = [0, 64], sizes = [2, 32], strides = [1, 1]} : vector<2x96xf32> to vector<2x32xf32>
    %35 = arith.addf %34, %16 : vector<2x32xf32>
    %36 = arith.mulf %31, %35 : vector<2x32xf32>
    %37 = arith.addf %33, %36 : vector<2x32xf32>
    %38 = math.tanh %37 : vector<2x32xf32>
    %cst_19 = arith.constant 1.000000e+00 : f32
    %39 = vector.broadcast %cst_19 : f32 to vector<2x32xf32>
    %40 = arith.subf %39, %32 : vector<2x32xf32>
    %41 = arith.mulf %40, %38 : vector<2x32xf32>
    %42 = arith.mulf %32, %17 : vector<2x32xf32>
    %43 = arith.addf %41, %42 : vector<2x32xf32>
    %44 = arith.index_cast %19 : i32 to index
    %c0_20 = arith.constant 0 : index
    %45 = vector.load %arg13[%44, %c0_20] : memref<16x32xf32, #tpu.memory_space<vmem>>, vector<2x32xf32>
    tpu.vector_store %arg13[%44, %c0_20], %43 {strides = array<i32>} : memref<16x32xf32, #tpu.memory_space<vmem>>, vector<2x32xf32>,
    %c1_i32 = arith.constant 1 : i32
    %c2_i32_21 = arith.constant 2 : i32
    %46 = arith.muli %c1_i32, %c2_i32_21 : i32
    %47 = tpu.assume_multiple %46, 2 : i32
    %48 = arith.index_cast %47 : i32 to index
    %c0_22 = arith.constant 0 : index
    %49 = vector.load %arg12[%48, %c0_22] : memref<16x96xf32, #tpu.memory_space<vmem>>, vector<2x96xf32>
    %cst_23 = arith.constant dense<0.000000e+00> : vector<2x96xf32>
    %50 = tpu.matmul %43, %1, %cst_23 {dimension_numbers = #tpu.dot_dimension_numbers<[1], [0], [0], [1], [0, 0, 1, 1], [], []>} : vector<2x32xf32>, vector<32x96xf32>, vector<2x96xf32> -> vector<2x96xf32>
    %51 = vector.extract_strided_slice %49 {offsets = [0, 0], sizes = [2, 64], strides = [1, 1]} : vector<2x96xf32> to vector<2x64xf32>
    %52 = vector.extract_strided_slice %50 {offsets = [0, 0], sizes = [2, 64], strides = [1, 1]} : vector<2x96xf32> to vector<2x64xf32>
    %53 = arith.addf %51, %52 : vector<2x64xf32>
    %54 = arith.negf %53 : vector<2x64xf32>
    %55 = math.exp %54 : vector<2x64xf32>
    %cst_24 = arith.constant 1.000000e+00 : f32
    %56 = vector.broadcast %cst_24 : f32 to vector<2x64xf32>
    %57 = arith.addf %56, %55 : vector<2x64xf32>
    %58 = arith.divf %56, %57 : vector<2x64xf32>
    %59 = vector.extract_strided_slice %58 {offsets = [0, 0], sizes = [2, 32], strides = [1, 1]} : vector<2x64xf32> to vector<2x32xf32>
    %60 = vector.extract_strided_slice %58 {offsets = [0, 32], sizes = [2, 32], strides = [1, 1]} : vector<2x64xf32> to vector<2x32xf32>
    %61 = vector.extract_strided_slice %49 {offsets = [0, 64], sizes = [2, 32], strides = [1, 1]} : vector<2x96xf32> to vector<2x32xf32>
    %62 = vector.extract_strided_slice %50 {offsets = [0, 64], sizes = [2, 32], strides = [1, 1]} : vector<2x96xf32> to vector<2x32xf32>
    %63 = arith.addf %62, %16 : vector<2x32xf32>
    %64 = arith.mulf %59, %63 : vector<2x32xf32>
    %65 = arith.addf %61, %64 : vector<2x32xf32>
    %66 = math.tanh %65 : vector<2x32xf32>
    %cst_25 = arith.constant 1.000000e+00 : f32
    %67 = vector.broadcast %cst_25 : f32 to vector<2x32xf32>
    %68 = arith.subf %67, %60 : vector<2x32xf32>
    %69 = arith.mulf %68, %66 : vector<2x32xf32>
    %70 = arith.mulf %60, %43 : vector<2x32xf32>
    %71 = arith.addf %69, %70 : vector<2x32xf32>
    %72 = arith.index_cast %47 : i32 to index
    %c0_26 = arith.constant 0 : index
    %73 = vector.load %arg13[%72, %c0_26] : memref<16x32xf32, #tpu.memory_space<vmem>>, vector<2x32xf32>
    tpu.vector_store %arg13[%72, %c0_26], %71 {strides = array<i32>} : memref<16x32xf32, #tpu.memory_space<vmem>>, vector<2x32xf32>,
    %c2_i32_27 = arith.constant 2 : i32
    %c2_i32_28 = arith.constant 2 : i32
    %74 = arith.muli %c2_i32_27, %c2_i32_28 : i32
    %75 = tpu.assume_multiple %74, 2 : i32
    %76 = arith.index_cast %75 : i32 to index
    %c0_29 = arith.constant 0 : index
    %77 = vector.load %arg12[%76, %c0_29] : memref<16x96xf32, #tpu.memory_space<vmem>>, vector<2x96xf32>
    %cst_30 = arith.constant dense<0.000000e+00> : vector<2x96xf32>
    %78 = tpu.matmul %71, %1, %cst_30 {dimension_numbers = #tpu.dot_dimension_numbers<[1], [0], [0], [1], [0, 0, 1, 1], [], []>} : vector<2x32xf32>, vector<32x96xf32>, vector<2x96xf32> -> vector<2x96xf32>
    %79 = vector.extract_strided_slice %77 {offsets = [0, 0], sizes = [2, 64], strides = [1, 1]} : vector<2x96xf32> to vector<2x64xf32>
    %80 = vector.extract_strided_slice %78 {offsets = [0, 0], sizes = [2, 64], strides = [1, 1]} : vector<2x96xf32> to vector<2x64xf32>
    %81 = arith.addf %79, %80 : vector<2x64xf32>
    %82 = arith.negf %81 : vector<2x64xf32>
    %83 = math.exp %82 : vector<2x64xf32>
    %cst_31 = arith.constant 1.000000e+00 : f32
    %84 = vector.broadcast %cst_31 : f32 to vector<2x64xf32>
    %85 = arith.addf %84, %83 : vector<2x64xf32>
    %86 = arith.divf %84, %85 : vector<2x64xf32>
    %87 = vector.extract_strided_slice %86 {offsets = [0, 0], sizes = [2, 32], strides = [1, 1]} : vector<2x64xf32> to vector<2x32xf32>
    %88 = vector.extract_strided_slice %86 {offsets = [0, 32], sizes = [2, 32], strides = [1, 1]} : vector<2x64xf32> to vector<2x32xf32>
    %89 = vector.extract_strided_slice %77 {offsets = [0, 64], sizes = [2, 32], strides = [1, 1]} : vector<2x96xf32> to vector<2x32xf32>
    %90 = vector.extract_strided_slice %78 {offsets = [0, 64], sizes = [2, 32], strides = [1, 1]} : vector<2x96xf32> to vector<2x32xf32>
    %91 = arith.addf %90, %16 : vector<2x32xf32>
    %92 = arith.mulf %87, %91 : vector<2x32xf32>
    %93 = arith.addf %89, %92 : vector<2x32xf32>
    %94 = math.tanh %93 : vector<2x32xf32>
    %cst_32 = arith.constant 1.000000e+00 : f32
    %95 = vector.broadcast %cst_32 : f32 to vector<2x32xf32>
    %96 = arith.subf %95, %88 : vector<2x32xf32>
    %97 = arith.mulf %96, %94 : vector<2x32xf32>
    %98 = arith.mulf %88, %71 : vector<2x32xf32>
    %99 = arith.addf %97, %98 : vector<2x32xf32>
    %100 = arith.index_cast %75 : i32 to index
    %c0_33 = arith.constant 0 : index
    %101 = vector.load %arg13[%100, %c0_33] : memref<16x32xf32, #tpu.memory_space<vmem>>, vector<2x32xf32>
    tpu.vector_store %arg13[%100, %c0_33], %99 {strides = array<i32>} : memref<16x32xf32, #tpu.memory_space<vmem>>, vector<2x32xf32>,
    %c3_i32 = arith.constant 3 : i32
    %c2_i32_34 = arith.constant 2 : i32
    %102 = arith.muli %c3_i32, %c2_i32_34 : i32
    %103 = tpu.assume_multiple %102, 2 : i32
    %104 = arith.index_cast %103 : i32 to index
    %c0_35 = arith.constant 0 : index
    %105 = vector.load %arg12[%104, %c0_35] : memref<16x96xf32, #tpu.memory_space<vmem>>, vector<2x96xf32>
    %cst_36 = arith.constant dense<0.000000e+00> : vector<2x96xf32>
    %106 = tpu.matmul %99, %1, %cst_36 {dimension_numbers = #tpu.dot_dimension_numbers<[1], [0], [0], [1], [0, 0, 1, 1], [], []>} : vector<2x32xf32>, vector<32x96xf32>, vector<2x96xf32> -> vector<2x96xf32>
    %107 = vector.extract_strided_slice %105 {offsets = [0, 0], sizes = [2, 64], strides = [1, 1]} : vector<2x96xf32> to vector<2x64xf32>
    %108 = vector.extract_strided_slice %106 {offsets = [0, 0], sizes = [2, 64], strides = [1, 1]} : vector<2x96xf32> to vector<2x64xf32>
    %109 = arith.addf %107, %108 : vector<2x64xf32>
    %110 = arith.negf %109 : vector<2x64xf32>
    %111 = math.exp %110 : vector<2x64xf32>
    %cst_37 = arith.constant 1.000000e+00 : f32
    %112 = vector.broadcast %cst_37 : f32 to vector<2x64xf32>
    %113 = arith.addf %112, %111 : vector<2x64xf32>
    %114 = arith.divf %112, %113 : vector<2x64xf32>
    %115 = vector.extract_strided_slice %114 {offsets = [0, 0], sizes = [2, 32], strides = [1, 1]} : vector<2x64xf32> to vector<2x32xf32>
    %116 = vector.extract_strided_slice %114 {offsets = [0, 32], sizes = [2, 32], strides = [1, 1]} : vector<2x64xf32> to vector<2x32xf32>
    %117 = vector.extract_strided_slice %105 {offsets = [0, 64], sizes = [2, 32], strides = [1, 1]} : vector<2x96xf32> to vector<2x32xf32>
    %118 = vector.extract_strided_slice %106 {offsets = [0, 64], sizes = [2, 32], strides = [1, 1]} : vector<2x96xf32> to vector<2x32xf32>
    %119 = arith.addf %118, %16 : vector<2x32xf32>
    %120 = arith.mulf %115, %119 : vector<2x32xf32>
    %121 = arith.addf %117, %120 : vector<2x32xf32>
    %122 = math.tanh %121 : vector<2x32xf32>
    %cst_38 = arith.constant 1.000000e+00 : f32
    %123 = vector.broadcast %cst_38 : f32 to vector<2x32xf32>
    %124 = arith.subf %123, %116 : vector<2x32xf32>
    %125 = arith.mulf %124, %122 : vector<2x32xf32>
    %126 = arith.mulf %116, %99 : vector<2x32xf32>
    %127 = arith.addf %125, %126 : vector<2x32xf32>
    %128 = arith.index_cast %103 : i32 to index
    %c0_39 = arith.constant 0 : index
    %129 = vector.load %arg13[%128, %c0_39] : memref<16x32xf32, #tpu.memory_space<vmem>>, vector<2x32xf32>
    tpu.vector_store %arg13[%128, %c0_39], %127 {strides = array<i32>} : memref<16x32xf32, #tpu.memory_space<vmem>>, vector<2x32xf32>,
    %c4_i32 = arith.constant 4 : i32
    %c2_i32_40 = arith.constant 2 : i32
    %130 = arith.muli %c4_i32, %c2_i32_40 : i32
    %131 = tpu.assume_multiple %130, 2 : i32
    %132 = arith.index_cast %131 : i32 to index
    %c0_41 = arith.constant 0 : index
    %133 = vector.load %arg12[%132, %c0_41] : memref<16x96xf32, #tpu.memory_space<vmem>>, vector<2x96xf32>
    %cst_42 = arith.constant dense<0.000000e+00> : vector<2x96xf32>
    %134 = tpu.matmul %127, %1, %cst_42 {dimension_numbers = #tpu.dot_dimension_numbers<[1], [0], [0], [1], [0, 0, 1, 1], [], []>} : vector<2x32xf32>, vector<32x96xf32>, vector<2x96xf32> -> vector<2x96xf32>
    %135 = vector.extract_strided_slice %133 {offsets = [0, 0], sizes = [2, 64], strides = [1, 1]} : vector<2x96xf32> to vector<2x64xf32>
    %136 = vector.extract_strided_slice %134 {offsets = [0, 0], sizes = [2, 64], strides = [1, 1]} : vector<2x96xf32> to vector<2x64xf32>
    %137 = arith.addf %135, %136 : vector<2x64xf32>
    %138 = arith.negf %137 : vector<2x64xf32>
    %139 = math.exp %138 : vector<2x64xf32>
    %cst_43 = arith.constant 1.000000e+00 : f32
    %140 = vector.broadcast %cst_43 : f32 to vector<2x64xf32>
    %141 = arith.addf %140, %139 : vector<2x64xf32>
    %142 = arith.divf %140, %141 : vector<2x64xf32>
    %143 = vector.extract_strided_slice %142 {offsets = [0, 0], sizes = [2, 32], strides = [1, 1]} : vector<2x64xf32> to vector<2x32xf32>
    %144 = vector.extract_strided_slice %142 {offsets = [0, 32], sizes = [2, 32], strides = [1, 1]} : vector<2x64xf32> to vector<2x32xf32>
    %145 = vector.extract_strided_slice %133 {offsets = [0, 64], sizes = [2, 32], strides = [1, 1]} : vector<2x96xf32> to vector<2x32xf32>
    %146 = vector.extract_strided_slice %134 {offsets = [0, 64], sizes = [2, 32], strides = [1, 1]} : vector<2x96xf32> to vector<2x32xf32>
    %147 = arith.addf %146, %16 : vector<2x32xf32>
    %148 = arith.mulf %143, %147 : vector<2x32xf32>
    %149 = arith.addf %145, %148 : vector<2x32xf32>
    %150 = math.tanh %149 : vector<2x32xf32>
    %cst_44 = arith.constant 1.000000e+00 : f32
    %151 = vector.broadcast %cst_44 : f32 to vector<2x32xf32>
    %152 = arith.subf %151, %144 : vector<2x32xf32>
    %153 = arith.mulf %152, %150 : vector<2x32xf32>
    %154 = arith.mulf %144, %127 : vector<2x32xf32>
    %155 = arith.addf %153, %154 : vector<2x32xf32>
    %156 = arith.index_cast %131 : i32 to index
    %c0_45 = arith.constant 0 : index
    %157 = vector.load %arg13[%156, %c0_45] : memref<16x32xf32, #tpu.memory_space<vmem>>, vector<2x32xf32>
    tpu.vector_store %arg13[%156, %c0_45], %155 {strides = array<i32>} : memref<16x32xf32, #tpu.memory_space<vmem>>, vector<2x32xf32>,
    %c5_i32 = arith.constant 5 : i32
    %c2_i32_46 = arith.constant 2 : i32
    %158 = arith.muli %c5_i32, %c2_i32_46 : i32
    %159 = tpu.assume_multiple %158, 2 : i32
    %160 = arith.index_cast %159 : i32 to index
    %c0_47 = arith.constant 0 : index
    %161 = vector.load %arg12[%160, %c0_47] : memref<16x96xf32, #tpu.memory_space<vmem>>, vector<2x96xf32>
    %cst_48 = arith.constant dense<0.000000e+00> : vector<2x96xf32>
    %162 = tpu.matmul %155, %1, %cst_48 {dimension_numbers = #tpu.dot_dimension_numbers<[1], [0], [0], [1], [0, 0, 1, 1], [], []>} : vector<2x32xf32>, vector<32x96xf32>, vector<2x96xf32> -> vector<2x96xf32>
    %163 = vector.extract_strided_slice %161 {offsets = [0, 0], sizes = [2, 64], strides = [1, 1]} : vector<2x96xf32> to vector<2x64xf32>
    %164 = vector.extract_strided_slice %162 {offsets = [0, 0], sizes = [2, 64], strides = [1, 1]} : vector<2x96xf32> to vector<2x64xf32>
    %165 = arith.addf %163, %164 : vector<2x64xf32>
    %166 = arith.negf %165 : vector<2x64xf32>
    %167 = math.exp %166 : vector<2x64xf32>
    %cst_49 = arith.constant 1.000000e+00 : f32
    %168 = vector.broadcast %cst_49 : f32 to vector<2x64xf32>
    %169 = arith.addf %168, %167 : vector<2x64xf32>
    %170 = arith.divf %168, %169 : vector<2x64xf32>
    %171 = vector.extract_strided_slice %170 {offsets = [0, 0], sizes = [2, 32], strides = [1, 1]} : vector<2x64xf32> to vector<2x32xf32>
    %172 = vector.extract_strided_slice %170 {offsets = [0, 32], sizes = [2, 32], strides = [1, 1]} : vector<2x64xf32> to vector<2x32xf32>
    %173 = vector.extract_strided_slice %161 {offsets = [0, 64], sizes = [2, 32], strides = [1, 1]} : vector<2x96xf32> to vector<2x32xf32>
    %174 = vector.extract_strided_slice %162 {offsets = [0, 64], sizes = [2, 32], strides = [1, 1]} : vector<2x96xf32> to vector<2x32xf32>
    %175 = arith.addf %174, %16 : vector<2x32xf32>
    %176 = arith.mulf %171, %175 : vector<2x32xf32>
    %177 = arith.addf %173, %176 : vector<2x32xf32>
    %178 = math.tanh %177 : vector<2x32xf32>
    %cst_50 = arith.constant 1.000000e+00 : f32
    %179 = vector.broadcast %cst_50 : f32 to vector<2x32xf32>
    %180 = arith.subf %179, %172 : vector<2x32xf32>
    %181 = arith.mulf %180, %178 : vector<2x32xf32>
    %182 = arith.mulf %172, %155 : vector<2x32xf32>
    %183 = arith.addf %181, %182 : vector<2x32xf32>
    %184 = arith.index_cast %159 : i32 to index
    %c0_51 = arith.constant 0 : index
    %185 = vector.load %arg13[%184, %c0_51] : memref<16x32xf32, #tpu.memory_space<vmem>>, vector<2x32xf32>
    tpu.vector_store %arg13[%184, %c0_51], %183 {strides = array<i32>} : memref<16x32xf32, #tpu.memory_space<vmem>>, vector<2x32xf32>,
    %c6_i32 = arith.constant 6 : i32
    %c2_i32_52 = arith.constant 2 : i32
    %186 = arith.muli %c6_i32, %c2_i32_52 : i32
    %187 = tpu.assume_multiple %186, 2 : i32
    %188 = arith.index_cast %187 : i32 to index
    %c0_53 = arith.constant 0 : index
    %189 = vector.load %arg12[%188, %c0_53] : memref<16x96xf32, #tpu.memory_space<vmem>>, vector<2x96xf32>
    %cst_54 = arith.constant dense<0.000000e+00> : vector<2x96xf32>
    %190 = tpu.matmul %183, %1, %cst_54 {dimension_numbers = #tpu.dot_dimension_numbers<[1], [0], [0], [1], [0, 0, 1, 1], [], []>} : vector<2x32xf32>, vector<32x96xf32>, vector<2x96xf32> -> vector<2x96xf32>
    %191 = vector.extract_strided_slice %189 {offsets = [0, 0], sizes = [2, 64], strides = [1, 1]} : vector<2x96xf32> to vector<2x64xf32>
    %192 = vector.extract_strided_slice %190 {offsets = [0, 0], sizes = [2, 64], strides = [1, 1]} : vector<2x96xf32> to vector<2x64xf32>
    %193 = arith.addf %191, %192 : vector<2x64xf32>
    %194 = arith.negf %193 : vector<2x64xf32>
    %195 = math.exp %194 : vector<2x64xf32>
    %cst_55 = arith.constant 1.000000e+00 : f32
    %196 = vector.broadcast %cst_55 : f32 to vector<2x64xf32>
    %197 = arith.addf %196, %195 : vector<2x64xf32>
    %198 = arith.divf %196, %197 : vector<2x64xf32>
    %199 = vector.extract_strided_slice %198 {offsets = [0, 0], sizes = [2, 32], strides = [1, 1]} : vector<2x64xf32> to vector<2x32xf32>
    %200 = vector.extract_strided_slice %198 {offsets = [0, 32], sizes = [2, 32], strides = [1, 1]} : vector<2x64xf32> to vector<2x32xf32>
    %201 = vector.extract_strided_slice %189 {offsets = [0, 64], sizes = [2, 32], strides = [1, 1]} : vector<2x96xf32> to vector<2x32xf32>
    %202 = vector.extract_strided_slice %190 {offsets = [0, 64], sizes = [2, 32], strides = [1, 1]} : vector<2x96xf32> to vector<2x32xf32>
    %203 = arith.addf %202, %16 : vector<2x32xf32>
    %204 = arith.mulf %199, %203 : vector<2x32xf32>
    %205 = arith.addf %201, %204 : vector<2x32xf32>
    %206 = math.tanh %205 : vector<2x32xf32>
    %cst_56 = arith.constant 1.000000e+00 : f32
    %207 = vector.broadcast %cst_56 : f32 to vector<2x32xf32>
    %208 = arith.subf %207, %200 : vector<2x32xf32>
    %209 = arith.mulf %208, %206 : vector<2x32xf32>
    %210 = arith.mulf %200, %183 : vector<2x32xf32>
    %211 = arith.addf %209, %210 : vector<2x32xf32>
    %212 = arith.index_cast %187 : i32 to index
    %c0_57 = arith.constant 0 : index
    %213 = vector.load %arg13[%212, %c0_57] : memref<16x32xf32, #tpu.memory_space<vmem>>, vector<2x32xf32>
    tpu.vector_store %arg13[%212, %c0_57], %211 {strides = array<i32>} : memref<16x32xf32, #tpu.memory_space<vmem>>, vector<2x32xf32>,
    %c7_i32 = arith.constant 7 : i32
    %c2_i32_58 = arith.constant 2 : i32
    %214 = arith.muli %c7_i32, %c2_i32_58 : i32
    %215 = tpu.assume_multiple %214, 2 : i32
    %216 = arith.index_cast %215 : i32 to index
    %c0_59 = arith.constant 0 : index
    %217 = vector.load %arg12[%216, %c0_59] : memref<16x96xf32, #tpu.memory_space<vmem>>, vector<2x96xf32>
    %cst_60 = arith.constant dense<0.000000e+00> : vector<2x96xf32>
    %218 = tpu.matmul %211, %1, %cst_60 {dimension_numbers = #tpu.dot_dimension_numbers<[1], [0], [0], [1], [0, 0, 1, 1], [], []>} : vector<2x32xf32>, vector<32x96xf32>, vector<2x96xf32> -> vector<2x96xf32>
    %219 = vector.extract_strided_slice %217 {offsets = [0, 0], sizes = [2, 64], strides = [1, 1]} : vector<2x96xf32> to vector<2x64xf32>
    %220 = vector.extract_strided_slice %218 {offsets = [0, 0], sizes = [2, 64], strides = [1, 1]} : vector<2x96xf32> to vector<2x64xf32>
    %221 = arith.addf %219, %220 : vector<2x64xf32>
    %222 = arith.negf %221 : vector<2x64xf32>
    %223 = math.exp %222 : vector<2x64xf32>
    %cst_61 = arith.constant 1.000000e+00 : f32
    %224 = vector.broadcast %cst_61 : f32 to vector<2x64xf32>
    %225 = arith.addf %224, %223 : vector<2x64xf32>
    %226 = arith.divf %224, %225 : vector<2x64xf32>
    %227 = vector.extract_strided_slice %226 {offsets = [0, 0], sizes = [2, 32], strides = [1, 1]} : vector<2x64xf32> to vector<2x32xf32>
    %228 = vector.extract_strided_slice %226 {offsets = [0, 32], sizes = [2, 32], strides = [1, 1]} : vector<2x64xf32> to vector<2x32xf32>
    %229 = vector.extract_strided_slice %217 {offsets = [0, 64], sizes = [2, 32], strides = [1, 1]} : vector<2x96xf32> to vector<2x32xf32>
    %230 = vector.extract_strided_slice %218 {offsets = [0, 64], sizes = [2, 32], strides = [1, 1]} : vector<2x96xf32> to vector<2x32xf32>
    %231 = arith.addf %230, %16 : vector<2x32xf32>
    %232 = arith.mulf %227, %231 : vector<2x32xf32>
    %233 = arith.addf %229, %232 : vector<2x32xf32>
    %234 = math.tanh %233 : vector<2x32xf32>
    %cst_62 = arith.constant 1.000000e+00 : f32
    %235 = vector.broadcast %cst_62 : f32 to vector<2x32xf32>
    %236 = arith.subf %235, %228 : vector<2x32xf32>
    %237 = arith.mulf %236, %234 : vector<2x32xf32>
    %238 = arith.mulf %228, %211 : vector<2x32xf32>
    %239 = arith.addf %237, %238 : vector<2x32xf32>
    %240 = arith.index_cast %215 : i32 to index
    %c0_63 = arith.constant 0 : index
    %241 = vector.load %arg13[%240, %c0_63] : memref<16x32xf32, #tpu.memory_space<vmem>>, vector<2x32xf32>
    tpu.vector_store %arg13[%240, %c0_63], %239 {strides = array<i32>} : memref<16x32xf32, #tpu.memory_space<vmem>>, vector<2x32xf32>,
    %c8_i32 = arith.constant 8 : i32
    %c0_64 = arith.constant 0 : index
    %c0_65 = arith.constant 0 : index
    %242 = vector.load %arg5[%c0_64, %c0_65] : memref<32x96xf32, #tpu.memory_space<vmem>>, vector<32x96xf32>
    %c0_66 = arith.constant 0 : index
    %c0_67 = arith.constant 0 : index
    %243 = vector.load %arg6[%c0_66, %c0_67] : memref<32x96xf32, #tpu.memory_space<vmem>>, vector<32x96xf32>
    %c0_68 = arith.constant 0 : index
    %c0_69 = arith.constant 0 : index
    %244 = vector.load %arg7[%c0_68, %c0_69] : memref<1x96xf32, #tpu.memory_space<vmem>>, vector<1x96xf32>
    %c0_70 = arith.constant 0 : index
    %c0_71 = arith.constant 0 : index
    %245 = vector.load %arg8[%c0_70, %c0_71] : memref<1x96xf32, #tpu.memory_space<vmem>>, vector<1x96xf32>
    %c0_72 = arith.constant 0 : index
    %c0_73 = arith.constant 0 : index
    %246 = vector.load %arg13[%c0_72, %c0_73] : memref<16x32xf32, #tpu.memory_space<vmem>>, vector<16x32xf32>
    %cst_74 = arith.constant dense<0.000000e+00> : vector<16x96xf32>
    %247 = tpu.matmul %246, %242, %cst_74 {dimension_numbers = #tpu.dot_dimension_numbers<[1], [0], [0], [1], [0, 0, 1, 1], [], []>} : vector<16x32xf32>, vector<32x96xf32>, vector<16x96xf32> -> vector<16x96xf32>
    %248 = vector.broadcast %244 : vector<1x96xf32> to vector<16x96xf32>
    %249 = arith.addf %247, %248 : vector<16x96xf32>
    %c0_75 = arith.constant 0 : index
    %c0_76 = arith.constant 0 : index
    %250 = vector.load %arg12[%c0_75, %c0_76] : memref<16x96xf32, #tpu.memory_space<vmem>>, vector<16x96xf32>
    tpu.vector_store %arg12[%c0_75, %c0_76], %249 {strides = array<i32>} : memref<16x96xf32, #tpu.memory_space<vmem>>, vector<16x96xf32>,
    %c0_77 = arith.constant 0 : index
    %c0_78 = arith.constant 0 : index
    %251 = vector.load %arg12[%c0_77, %c0_78] : memref<16x96xf32, #tpu.memory_space<vmem>>, vector<16x64xf32>
    %252 = vector.extract_strided_slice %245 {offsets = [0, 0], sizes = [1, 64], strides = [1, 1]} : vector<1x96xf32> to vector<1x64xf32>
    %253 = vector.broadcast %252 : vector<1x64xf32> to vector<16x64xf32>
    %254 = arith.addf %251, %253 : vector<16x64xf32>
    %c0_79 = arith.constant 0 : index
    %c0_80 = arith.constant 0 : index
    %255 = vector.load %arg12[%c0_79, %c0_80] : memref<16x96xf32, #tpu.memory_space<vmem>>, vector<16x64xf32>
    tpu.vector_store %arg12[%c0_79, %c0_80], %254 {strides = array<i32>} : memref<16x96xf32, #tpu.memory_space<vmem>>, vector<16x64xf32>,
    %256 = vector.extract_strided_slice %245 {offsets = [0, 64], sizes = [1, 32], strides = [1, 1]} : vector<1x96xf32> to vector<1x32xf32>
    %257 = vector.shape_cast %256 : vector<1x32xf32> to vector<1x32xf32>
    %258 = vector.broadcast %257 : vector<1x32xf32> to vector<2x32xf32>
    %cst_81 = arith.constant 0.000000e+00 : f32
    %259 = vector.broadcast %cst_81 : f32 to vector<2x32xf32>
    %c0_i32_82 = arith.constant 0 : i32
    %c2_i32_83 = arith.constant 2 : i32
    %260 = arith.muli %c0_i32_82, %c2_i32_83 : i32
    %261 = tpu.assume_multiple %260, 2 : i32
    %262 = arith.index_cast %261 : i32 to index
    %c0_84 = arith.constant 0 : index
    %263 = vector.load %arg12[%262, %c0_84] : memref<16x96xf32, #tpu.memory_space<vmem>>, vector<2x96xf32>
    %cst_85 = arith.constant dense<0.000000e+00> : vector<2x96xf32>
    %264 = tpu.matmul %259, %243, %cst_85 {dimension_numbers = #tpu.dot_dimension_numbers<[1], [0], [0], [1], [0, 0, 1, 1], [], []>} : vector<2x32xf32>, vector<32x96xf32>, vector<2x96xf32> -> vector<2x96xf32>
    %265 = vector.extract_strided_slice %263 {offsets = [0, 0], sizes = [2, 64], strides = [1, 1]} : vector<2x96xf32> to vector<2x64xf32>
    %266 = vector.extract_strided_slice %264 {offsets = [0, 0], sizes = [2, 64], strides = [1, 1]} : vector<2x96xf32> to vector<2x64xf32>
    %267 = arith.addf %265, %266 : vector<2x64xf32>
    %268 = arith.negf %267 : vector<2x64xf32>
    %269 = math.exp %268 : vector<2x64xf32>
    %cst_86 = arith.constant 1.000000e+00 : f32
    %270 = vector.broadcast %cst_86 : f32 to vector<2x64xf32>
    %271 = arith.addf %270, %269 : vector<2x64xf32>
    %272 = arith.divf %270, %271 : vector<2x64xf32>
    %273 = vector.extract_strided_slice %272 {offsets = [0, 0], sizes = [2, 32], strides = [1, 1]} : vector<2x64xf32> to vector<2x32xf32>
    %274 = vector.extract_strided_slice %272 {offsets = [0, 32], sizes = [2, 32], strides = [1, 1]} : vector<2x64xf32> to vector<2x32xf32>
    %275 = vector.extract_strided_slice %263 {offsets = [0, 64], sizes = [2, 32], strides = [1, 1]} : vector<2x96xf32> to vector<2x32xf32>
    %276 = vector.extract_strided_slice %264 {offsets = [0, 64], sizes = [2, 32], strides = [1, 1]} : vector<2x96xf32> to vector<2x32xf32>
    %277 = arith.addf %276, %258 : vector<2x32xf32>
    %278 = arith.mulf %273, %277 : vector<2x32xf32>
    %279 = arith.addf %275, %278 : vector<2x32xf32>
    %280 = math.tanh %279 : vector<2x32xf32>
    %cst_87 = arith.constant 1.000000e+00 : f32
    %281 = vector.broadcast %cst_87 : f32 to vector<2x32xf32>
    %282 = arith.subf %281, %274 : vector<2x32xf32>
    %283 = arith.mulf %282, %280 : vector<2x32xf32>
    %284 = arith.mulf %274, %259 : vector<2x32xf32>
    %285 = arith.addf %283, %284 : vector<2x32xf32>
    %286 = arith.index_cast %261 : i32 to index
    %c0_88 = arith.constant 0 : index
    %287 = vector.load %arg13[%286, %c0_88] : memref<16x32xf32, #tpu.memory_space<vmem>>, vector<2x32xf32>
    tpu.vector_store %arg13[%286, %c0_88], %285 {strides = array<i32>} : memref<16x32xf32, #tpu.memory_space<vmem>>, vector<2x32xf32>,
    %c1_i32_89 = arith.constant 1 : i32
    %c2_i32_90 = arith.constant 2 : i32
    %288 = arith.muli %c1_i32_89, %c2_i32_90 : i32
    %289 = tpu.assume_multiple %288, 2 : i32
    %290 = arith.index_cast %289 : i32 to index
    %c0_91 = arith.constant 0 : index
    %291 = vector.load %arg12[%290, %c0_91] : memref<16x96xf32, #tpu.memory_space<vmem>>, vector<2x96xf32>
    %cst_92 = arith.constant dense<0.000000e+00> : vector<2x96xf32>
    %292 = tpu.matmul %285, %243, %cst_92 {dimension_numbers = #tpu.dot_dimension_numbers<[1], [0], [0], [1], [0, 0, 1, 1], [], []>} : vector<2x32xf32>, vector<32x96xf32>, vector<2x96xf32> -> vector<2x96xf32>
    %293 = vector.extract_strided_slice %291 {offsets = [0, 0], sizes = [2, 64], strides = [1, 1]} : vector<2x96xf32> to vector<2x64xf32>
    %294 = vector.extract_strided_slice %292 {offsets = [0, 0], sizes = [2, 64], strides = [1, 1]} : vector<2x96xf32> to vector<2x64xf32>
    %295 = arith.addf %293, %294 : vector<2x64xf32>
    %296 = arith.negf %295 : vector<2x64xf32>
    %297 = math.exp %296 : vector<2x64xf32>
    %cst_93 = arith.constant 1.000000e+00 : f32
    %298 = vector.broadcast %cst_93 : f32 to vector<2x64xf32>
    %299 = arith.addf %298, %297 : vector<2x64xf32>
    %300 = arith.divf %298, %299 : vector<2x64xf32>
    %301 = vector.extract_strided_slice %300 {offsets = [0, 0], sizes = [2, 32], strides = [1, 1]} : vector<2x64xf32> to vector<2x32xf32>
    %302 = vector.extract_strided_slice %300 {offsets = [0, 32], sizes = [2, 32], strides = [1, 1]} : vector<2x64xf32> to vector<2x32xf32>
    %303 = vector.extract_strided_slice %291 {offsets = [0, 64], sizes = [2, 32], strides = [1, 1]} : vector<2x96xf32> to vector<2x32xf32>
    %304 = vector.extract_strided_slice %292 {offsets = [0, 64], sizes = [2, 32], strides = [1, 1]} : vector<2x96xf32> to vector<2x32xf32>
    %305 = arith.addf %304, %258 : vector<2x32xf32>
    %306 = arith.mulf %301, %305 : vector<2x32xf32>
    %307 = arith.addf %303, %306 : vector<2x32xf32>
    %308 = math.tanh %307 : vector<2x32xf32>
    %cst_94 = arith.constant 1.000000e+00 : f32
    %309 = vector.broadcast %cst_94 : f32 to vector<2x32xf32>
    %310 = arith.subf %309, %302 : vector<2x32xf32>
    %311 = arith.mulf %310, %308 : vector<2x32xf32>
    %312 = arith.mulf %302, %285 : vector<2x32xf32>
    %313 = arith.addf %311, %312 : vector<2x32xf32>
    %314 = arith.index_cast %289 : i32 to index
    %c0_95 = arith.constant 0 : index
    %315 = vector.load %arg13[%314, %c0_95] : memref<16x32xf32, #tpu.memory_space<vmem>>, vector<2x32xf32>
    tpu.vector_store %arg13[%314, %c0_95], %313 {strides = array<i32>} : memref<16x32xf32, #tpu.memory_space<vmem>>, vector<2x32xf32>,
    %c2_i32_96 = arith.constant 2 : i32
    %c2_i32_97 = arith.constant 2 : i32
    %316 = arith.muli %c2_i32_96, %c2_i32_97 : i32
    %317 = tpu.assume_multiple %316, 2 : i32
    %318 = arith.index_cast %317 : i32 to index
    %c0_98 = arith.constant 0 : index
    %319 = vector.load %arg12[%318, %c0_98] : memref<16x96xf32, #tpu.memory_space<vmem>>, vector<2x96xf32>
    %cst_99 = arith.constant dense<0.000000e+00> : vector<2x96xf32>
    %320 = tpu.matmul %313, %243, %cst_99 {dimension_numbers = #tpu.dot_dimension_numbers<[1], [0], [0], [1], [0, 0, 1, 1], [], []>} : vector<2x32xf32>, vector<32x96xf32>, vector<2x96xf32> -> vector<2x96xf32>
    %321 = vector.extract_strided_slice %319 {offsets = [0, 0], sizes = [2, 64], strides = [1, 1]} : vector<2x96xf32> to vector<2x64xf32>
    %322 = vector.extract_strided_slice %320 {offsets = [0, 0], sizes = [2, 64], strides = [1, 1]} : vector<2x96xf32> to vector<2x64xf32>
    %323 = arith.addf %321, %322 : vector<2x64xf32>
    %324 = arith.negf %323 : vector<2x64xf32>
    %325 = math.exp %324 : vector<2x64xf32>
    %cst_100 = arith.constant 1.000000e+00 : f32
    %326 = vector.broadcast %cst_100 : f32 to vector<2x64xf32>
    %327 = arith.addf %326, %325 : vector<2x64xf32>
    %328 = arith.divf %326, %327 : vector<2x64xf32>
    %329 = vector.extract_strided_slice %328 {offsets = [0, 0], sizes = [2, 32], strides = [1, 1]} : vector<2x64xf32> to vector<2x32xf32>
    %330 = vector.extract_strided_slice %328 {offsets = [0, 32], sizes = [2, 32], strides = [1, 1]} : vector<2x64xf32> to vector<2x32xf32>
    %331 = vector.extract_strided_slice %319 {offsets = [0, 64], sizes = [2, 32], strides = [1, 1]} : vector<2x96xf32> to vector<2x32xf32>
    %332 = vector.extract_strided_slice %320 {offsets = [0, 64], sizes = [2, 32], strides = [1, 1]} : vector<2x96xf32> to vector<2x32xf32>
    %333 = arith.addf %332, %258 : vector<2x32xf32>
    %334 = arith.mulf %329, %333 : vector<2x32xf32>
    %335 = arith.addf %331, %334 : vector<2x32xf32>
    %336 = math.tanh %335 : vector<2x32xf32>
    %cst_101 = arith.constant 1.000000e+00 : f32
    %337 = vector.broadcast %cst_101 : f32 to vector<2x32xf32>
    %338 = arith.subf %337, %330 : vector<2x32xf32>
    %339 = arith.mulf %338, %336 : vector<2x32xf32>
    %340 = arith.mulf %330, %313 : vector<2x32xf32>
    %341 = arith.addf %339, %340 : vector<2x32xf32>
    %342 = arith.index_cast %317 : i32 to index
    %c0_102 = arith.constant 0 : index
    %343 = vector.load %arg13[%342, %c0_102] : memref<16x32xf32, #tpu.memory_space<vmem>>, vector<2x32xf32>
    tpu.vector_store %arg13[%342, %c0_102], %341 {strides = array<i32>} : memref<16x32xf32, #tpu.memory_space<vmem>>, vector<2x32xf32>,
    %c3_i32_103 = arith.constant 3 : i32
    %c2_i32_104 = arith.constant 2 : i32
    %344 = arith.muli %c3_i32_103, %c2_i32_104 : i32
    %345 = tpu.assume_multiple %344, 2 : i32
    %346 = arith.index_cast %345 : i32 to index
    %c0_105 = arith.constant 0 : index
    %347 = vector.load %arg12[%346, %c0_105] : memref<16x96xf32, #tpu.memory_space<vmem>>, vector<2x96xf32>
    %cst_106 = arith.constant dense<0.000000e+00> : vector<2x96xf32>
    %348 = tpu.matmul %341, %243, %cst_106 {dimension_numbers = #tpu.dot_dimension_numbers<[1], [0], [0], [1], [0, 0, 1, 1], [], []>} : vector<2x32xf32>, vector<32x96xf32>, vector<2x96xf32> -> vector<2x96xf32>
    %349 = vector.extract_strided_slice %347 {offsets = [0, 0], sizes = [2, 64], strides = [1, 1]} : vector<2x96xf32> to vector<2x64xf32>
    %350 = vector.extract_strided_slice %348 {offsets = [0, 0], sizes = [2, 64], strides = [1, 1]} : vector<2x96xf32> to vector<2x64xf32>
    %351 = arith.addf %349, %350 : vector<2x64xf32>
    %352 = arith.negf %351 : vector<2x64xf32>
    %353 = math.exp %352 : vector<2x64xf32>
    %cst_107 = arith.constant 1.000000e+00 : f32
    %354 = vector.broadcast %cst_107 : f32 to vector<2x64xf32>
    %355 = arith.addf %354, %353 : vector<2x64xf32>
    %356 = arith.divf %354, %355 : vector<2x64xf32>
    %357 = vector.extract_strided_slice %356 {offsets = [0, 0], sizes = [2, 32], strides = [1, 1]} : vector<2x64xf32> to vector<2x32xf32>
    %358 = vector.extract_strided_slice %356 {offsets = [0, 32], sizes = [2, 32], strides = [1, 1]} : vector<2x64xf32> to vector<2x32xf32>
    %359 = vector.extract_strided_slice %347 {offsets = [0, 64], sizes = [2, 32], strides = [1, 1]} : vector<2x96xf32> to vector<2x32xf32>
    %360 = vector.extract_strided_slice %348 {offsets = [0, 64], sizes = [2, 32], strides = [1, 1]} : vector<2x96xf32> to vector<2x32xf32>
    %361 = arith.addf %360, %258 : vector<2x32xf32>
    %362 = arith.mulf %357, %361 : vector<2x32xf32>
    %363 = arith.addf %359, %362 : vector<2x32xf32>
    %364 = math.tanh %363 : vector<2x32xf32>
    %cst_108 = arith.constant 1.000000e+00 : f32
    %365 = vector.broadcast %cst_108 : f32 to vector<2x32xf32>
    %366 = arith.subf %365, %358 : vector<2x32xf32>
    %367 = arith.mulf %366, %364 : vector<2x32xf32>
    %368 = arith.mulf %358, %341 : vector<2x32xf32>
    %369 = arith.addf %367, %368 : vector<2x32xf32>
    %370 = arith.index_cast %345 : i32 to index
    %c0_109 = arith.constant 0 : index
    %371 = vector.load %arg13[%370, %c0_109] : memref<16x32xf32, #tpu.memory_space<vmem>>, vector<2x32xf32>
    tpu.vector_store %arg13[%370, %c0_109], %369 {strides = array<i32>} : memref<16x32xf32, #tpu.memory_space<vmem>>, vector<2x32xf32>,
    %c4_i32_110 = arith.constant 4 : i32
    %c2_i32_111 = arith.constant 2 : i32
    %372 = arith.muli %c4_i32_110, %c2_i32_111 : i32
    %373 = tpu.assume_multiple %372, 2 : i32
    %374 = arith.index_cast %373 : i32 to index
    %c0_112 = arith.constant 0 : index
    %375 = vector.load %arg12[%374, %c0_112] : memref<16x96xf32, #tpu.memory_space<vmem>>, vector<2x96xf32>
    %cst_113 = arith.constant dense<0.000000e+00> : vector<2x96xf32>
    %376 = tpu.matmul %369, %243, %cst_113 {dimension_numbers = #tpu.dot_dimension_numbers<[1], [0], [0], [1], [0, 0, 1, 1], [], []>} : vector<2x32xf32>, vector<32x96xf32>, vector<2x96xf32> -> vector<2x96xf32>
    %377 = vector.extract_strided_slice %375 {offsets = [0, 0], sizes = [2, 64], strides = [1, 1]} : vector<2x96xf32> to vector<2x64xf32>
    %378 = vector.extract_strided_slice %376 {offsets = [0, 0], sizes = [2, 64], strides = [1, 1]} : vector<2x96xf32> to vector<2x64xf32>
    %379 = arith.addf %377, %378 : vector<2x64xf32>
    %380 = arith.negf %379 : vector<2x64xf32>
    %381 = math.exp %380 : vector<2x64xf32>
    %cst_114 = arith.constant 1.000000e+00 : f32
    %382 = vector.broadcast %cst_114 : f32 to vector<2x64xf32>
    %383 = arith.addf %382, %381 : vector<2x64xf32>
    %384 = arith.divf %382, %383 : vector<2x64xf32>
    %385 = vector.extract_strided_slice %384 {offsets = [0, 0], sizes = [2, 32], strides = [1, 1]} : vector<2x64xf32> to vector<2x32xf32>
    %386 = vector.extract_strided_slice %384 {offsets = [0, 32], sizes = [2, 32], strides = [1, 1]} : vector<2x64xf32> to vector<2x32xf32>
    %387 = vector.extract_strided_slice %375 {offsets = [0, 64], sizes = [2, 32], strides = [1, 1]} : vector<2x96xf32> to vector<2x32xf32>
    %388 = vector.extract_strided_slice %376 {offsets = [0, 64], sizes = [2, 32], strides = [1, 1]} : vector<2x96xf32> to vector<2x32xf32>
    %389 = arith.addf %388, %258 : vector<2x32xf32>
    %390 = arith.mulf %385, %389 : vector<2x32xf32>
    %391 = arith.addf %387, %390 : vector<2x32xf32>
    %392 = math.tanh %391 : vector<2x32xf32>
    %cst_115 = arith.constant 1.000000e+00 : f32
    %393 = vector.broadcast %cst_115 : f32 to vector<2x32xf32>
    %394 = arith.subf %393, %386 : vector<2x32xf32>
    %395 = arith.mulf %394, %392 : vector<2x32xf32>
    %396 = arith.mulf %386, %369 : vector<2x32xf32>
    %397 = arith.addf %395, %396 : vector<2x32xf32>
    %398 = arith.index_cast %373 : i32 to index
    %c0_116 = arith.constant 0 : index
    %399 = vector.load %arg13[%398, %c0_116] : memref<16x32xf32, #tpu.memory_space<vmem>>, vector<2x32xf32>
    tpu.vector_store %arg13[%398, %c0_116], %397 {strides = array<i32>} : memref<16x32xf32, #tpu.memory_space<vmem>>, vector<2x32xf32>,
    %c5_i32_117 = arith.constant 5 : i32
    %c2_i32_118 = arith.constant 2 : i32
    %400 = arith.muli %c5_i32_117, %c2_i32_118 : i32
    %401 = tpu.assume_multiple %400, 2 : i32
    %402 = arith.index_cast %401 : i32 to index
    %c0_119 = arith.constant 0 : index
    %403 = vector.load %arg12[%402, %c0_119] : memref<16x96xf32, #tpu.memory_space<vmem>>, vector<2x96xf32>
    %cst_120 = arith.constant dense<0.000000e+00> : vector<2x96xf32>
    %404 = tpu.matmul %397, %243, %cst_120 {dimension_numbers = #tpu.dot_dimension_numbers<[1], [0], [0], [1], [0, 0, 1, 1], [], []>} : vector<2x32xf32>, vector<32x96xf32>, vector<2x96xf32> -> vector<2x96xf32>
    %405 = vector.extract_strided_slice %403 {offsets = [0, 0], sizes = [2, 64], strides = [1, 1]} : vector<2x96xf32> to vector<2x64xf32>
    %406 = vector.extract_strided_slice %404 {offsets = [0, 0], sizes = [2, 64], strides = [1, 1]} : vector<2x96xf32> to vector<2x64xf32>
    %407 = arith.addf %405, %406 : vector<2x64xf32>
    %408 = arith.negf %407 : vector<2x64xf32>
    %409 = math.exp %408 : vector<2x64xf32>
    %cst_121 = arith.constant 1.000000e+00 : f32
    %410 = vector.broadcast %cst_121 : f32 to vector<2x64xf32>
    %411 = arith.addf %410, %409 : vector<2x64xf32>
    %412 = arith.divf %410, %411 : vector<2x64xf32>
    %413 = vector.extract_strided_slice %412 {offsets = [0, 0], sizes = [2, 32], strides = [1, 1]} : vector<2x64xf32> to vector<2x32xf32>
    %414 = vector.extract_strided_slice %412 {offsets = [0, 32], sizes = [2, 32], strides = [1, 1]} : vector<2x64xf32> to vector<2x32xf32>
    %415 = vector.extract_strided_slice %403 {offsets = [0, 64], sizes = [2, 32], strides = [1, 1]} : vector<2x96xf32> to vector<2x32xf32>
    %416 = vector.extract_strided_slice %404 {offsets = [0, 64], sizes = [2, 32], strides = [1, 1]} : vector<2x96xf32> to vector<2x32xf32>
    %417 = arith.addf %416, %258 : vector<2x32xf32>
    %418 = arith.mulf %413, %417 : vector<2x32xf32>
    %419 = arith.addf %415, %418 : vector<2x32xf32>
    %420 = math.tanh %419 : vector<2x32xf32>
    %cst_122 = arith.constant 1.000000e+00 : f32
    %421 = vector.broadcast %cst_122 : f32 to vector<2x32xf32>
    %422 = arith.subf %421, %414 : vector<2x32xf32>
    %423 = arith.mulf %422, %420 : vector<2x32xf32>
    %424 = arith.mulf %414, %397 : vector<2x32xf32>
    %425 = arith.addf %423, %424 : vector<2x32xf32>
    %426 = arith.index_cast %401 : i32 to index
    %c0_123 = arith.constant 0 : index
    %427 = vector.load %arg13[%426, %c0_123] : memref<16x32xf32, #tpu.memory_space<vmem>>, vector<2x32xf32>
    tpu.vector_store %arg13[%426, %c0_123], %425 {strides = array<i32>} : memref<16x32xf32, #tpu.memory_space<vmem>>, vector<2x32xf32>,
    %c6_i32_124 = arith.constant 6 : i32
    %c2_i32_125 = arith.constant 2 : i32
    %428 = arith.muli %c6_i32_124, %c2_i32_125 : i32
    %429 = tpu.assume_multiple %428, 2 : i32
    %430 = arith.index_cast %429 : i32 to index
    %c0_126 = arith.constant 0 : index
    %431 = vector.load %arg12[%430, %c0_126] : memref<16x96xf32, #tpu.memory_space<vmem>>, vector<2x96xf32>
    %cst_127 = arith.constant dense<0.000000e+00> : vector<2x96xf32>
    %432 = tpu.matmul %425, %243, %cst_127 {dimension_numbers = #tpu.dot_dimension_numbers<[1], [0], [0], [1], [0, 0, 1, 1], [], []>} : vector<2x32xf32>, vector<32x96xf32>, vector<2x96xf32> -> vector<2x96xf32>
    %433 = vector.extract_strided_slice %431 {offsets = [0, 0], sizes = [2, 64], strides = [1, 1]} : vector<2x96xf32> to vector<2x64xf32>
    %434 = vector.extract_strided_slice %432 {offsets = [0, 0], sizes = [2, 64], strides = [1, 1]} : vector<2x96xf32> to vector<2x64xf32>
    %435 = arith.addf %433, %434 : vector<2x64xf32>
    %436 = arith.negf %435 : vector<2x64xf32>
    %437 = math.exp %436 : vector<2x64xf32>
    %cst_128 = arith.constant 1.000000e+00 : f32
    %438 = vector.broadcast %cst_128 : f32 to vector<2x64xf32>
    %439 = arith.addf %438, %437 : vector<2x64xf32>
    %440 = arith.divf %438, %439 : vector<2x64xf32>
    %441 = vector.extract_strided_slice %440 {offsets = [0, 0], sizes = [2, 32], strides = [1, 1]} : vector<2x64xf32> to vector<2x32xf32>
    %442 = vector.extract_strided_slice %440 {offsets = [0, 32], sizes = [2, 32], strides = [1, 1]} : vector<2x64xf32> to vector<2x32xf32>
    %443 = vector.extract_strided_slice %431 {offsets = [0, 64], sizes = [2, 32], strides = [1, 1]} : vector<2x96xf32> to vector<2x32xf32>
    %444 = vector.extract_strided_slice %432 {offsets = [0, 64], sizes = [2, 32], strides = [1, 1]} : vector<2x96xf32> to vector<2x32xf32>
    %445 = arith.addf %444, %258 : vector<2x32xf32>
    %446 = arith.mulf %441, %445 : vector<2x32xf32>
    %447 = arith.addf %443, %446 : vector<2x32xf32>
    %448 = math.tanh %447 : vector<2x32xf32>
    %cst_129 = arith.constant 1.000000e+00 : f32
    %449 = vector.broadcast %cst_129 : f32 to vector<2x32xf32>
    %450 = arith.subf %449, %442 : vector<2x32xf32>
    %451 = arith.mulf %450, %448 : vector<2x32xf32>
    %452 = arith.mulf %442, %425 : vector<2x32xf32>
    %453 = arith.addf %451, %452 : vector<2x32xf32>
    %454 = arith.index_cast %429 : i32 to index
    %c0_130 = arith.constant 0 : index
    %455 = vector.load %arg13[%454, %c0_130] : memref<16x32xf32, #tpu.memory_space<vmem>>, vector<2x32xf32>
    tpu.vector_store %arg13[%454, %c0_130], %453 {strides = array<i32>} : memref<16x32xf32, #tpu.memory_space<vmem>>, vector<2x32xf32>,
    %c7_i32_131 = arith.constant 7 : i32
    %c2_i32_132 = arith.constant 2 : i32
    %456 = arith.muli %c7_i32_131, %c2_i32_132 : i32
    %457 = tpu.assume_multiple %456, 2 : i32
    %458 = arith.index_cast %457 : i32 to index
    %c0_133 = arith.constant 0 : index
    %459 = vector.load %arg12[%458, %c0_133] : memref<16x96xf32, #tpu.memory_space<vmem>>, vector<2x96xf32>
    %cst_134 = arith.constant dense<0.000000e+00> : vector<2x96xf32>
    %460 = tpu.matmul %453, %243, %cst_134 {dimension_numbers = #tpu.dot_dimension_numbers<[1], [0], [0], [1], [0, 0, 1, 1], [], []>} : vector<2x32xf32>, vector<32x96xf32>, vector<2x96xf32> -> vector<2x96xf32>
    %461 = vector.extract_strided_slice %459 {offsets = [0, 0], sizes = [2, 64], strides = [1, 1]} : vector<2x96xf32> to vector<2x64xf32>
    %462 = vector.extract_strided_slice %460 {offsets = [0, 0], sizes = [2, 64], strides = [1, 1]} : vector<2x96xf32> to vector<2x64xf32>
    %463 = arith.addf %461, %462 : vector<2x64xf32>
    %464 = arith.negf %463 : vector<2x64xf32>
    %465 = math.exp %464 : vector<2x64xf32>
    %cst_135 = arith.constant 1.000000e+00 : f32
    %466 = vector.broadcast %cst_135 : f32 to vector<2x64xf32>
    %467 = arith.addf %466, %465 : vector<2x64xf32>
    %468 = arith.divf %466, %467 : vector<2x64xf32>
    %469 = vector.extract_strided_slice %468 {offsets = [0, 0], sizes = [2, 32], strides = [1, 1]} : vector<2x64xf32> to vector<2x32xf32>
    %470 = vector.extract_strided_slice %468 {offsets = [0, 32], sizes = [2, 32], strides = [1, 1]} : vector<2x64xf32> to vector<2x32xf32>
    %471 = vector.extract_strided_slice %459 {offsets = [0, 64], sizes = [2, 32], strides = [1, 1]} : vector<2x96xf32> to vector<2x32xf32>
    %472 = vector.extract_strided_slice %460 {offsets = [0, 64], sizes = [2, 32], strides = [1, 1]} : vector<2x96xf32> to vector<2x32xf32>
    %473 = arith.addf %472, %258 : vector<2x32xf32>
    %474 = arith.mulf %469, %473 : vector<2x32xf32>
    %475 = arith.addf %471, %474 : vector<2x32xf32>
    %476 = math.tanh %475 : vector<2x32xf32>
    %cst_136 = arith.constant 1.000000e+00 : f32
    %477 = vector.broadcast %cst_136 : f32 to vector<2x32xf32>
    %478 = arith.subf %477, %470 : vector<2x32xf32>
    %479 = arith.mulf %478, %476 : vector<2x32xf32>
    %480 = arith.mulf %470, %453 : vector<2x32xf32>
    %481 = arith.addf %479, %480 : vector<2x32xf32>
    %482 = arith.index_cast %457 : i32 to index
    %c0_137 = arith.constant 0 : index
    %483 = vector.load %arg13[%482, %c0_137] : memref<16x32xf32, #tpu.memory_space<vmem>>, vector<2x32xf32>
    tpu.vector_store %arg13[%482, %c0_137], %481 {strides = array<i32>} : memref<16x32xf32, #tpu.memory_space<vmem>>, vector<2x32xf32>,
    %c8_i32_138 = arith.constant 8 : i32
    %c0_139 = arith.constant 0 : index
    %c0_140 = arith.constant 0 : index
    %484 = vector.load %arg13[%c0_139, %c0_140] : memref<16x32xf32, #tpu.memory_space<vmem>>, vector<16x32xf32>
    %c0_141 = arith.constant 0 : index
    %c0_142 = arith.constant 0 : index
    %485 = vector.load %arg9[%c0_141, %c0_142] : memref<32x4xf32, #tpu.memory_space<vmem>>, vector<32x4xf32>
    %cst_143 = arith.constant dense<0.000000e+00> : vector<16x4xf32>
    %486 = tpu.matmul %484, %485, %cst_143 {dimension_numbers = #tpu.dot_dimension_numbers<[1], [0], [0], [1], [0, 0, 1, 1], [], []>} : vector<16x32xf32>, vector<32x4xf32>, vector<16x4xf32> -> vector<16x4xf32>
    %c0_144 = arith.constant 0 : index
    %c0_145 = arith.constant 0 : index
    %487 = vector.load %arg10[%c0_144, %c0_145] : memref<1x4xf32, #tpu.memory_space<vmem>>, vector<1x4xf32>
    %488 = vector.broadcast %487 : vector<1x4xf32> to vector<16x4xf32>
    %489 = arith.addf %486, %488 : vector<16x4xf32>
    %c0_146 = arith.constant 0 : index
    %c0_147 = arith.constant 0 : index
    %490 = vector.load %arg11[%c0_146, %c0_147] : memref<16x4xf32, #tpu.memory_space<vmem>>, vector<16x4xf32>
    tpu.vector_store %arg11[%c0_146, %c0_147], %489 {strides = array<i32>} : memref<16x4xf32, #tpu.memory_space<vmem>>, vector<16x4xf32>,
    return
  }
}

</mosaic_0001>

<bundles_post_ra>
// kernel: tpu_custom_call.1
= control target key start
LH: loop header
LB: loop body
LE: loop exit
PB: predicated region body
PF: predicated region fallthrough
CT: control target
= control target key end

     0   :  { %16 = vsyncpa [#allocation5], 0  ;;  %s3057_s0 = inlined_call_operand.vmem [shape: f32[16,8], index: 0, kind: input, shape index: {}]   ;;  %s3058_s1 = inlined_call_operand.hbm [shape: f32[8,96], index: 1, kind: input, shape index: {}]   ;;  %s3059_s2 = inlined_call_operand.vmem [shape: f32[32,96], index: 2, kind: input, shape index: {}]   ;;  %s3060_s3 = inlined_call_operand.vmem [shape: f32[1,96], index: 3, kind: input, shape index: {}]   ;;  %s3061_s4 = inlined_call_operand.hbm [shape: f32[1,96], index: 4, kind: input, shape index: {}]   ;;  %s3062_s5 = inlined_call_operand.vmem [shape: f32[32,96], index: 5, kind: input, shape index: {}]   ;;  %s3063_s6 = inlined_call_operand.hbm [shape: f32[32,96], index: 6, kind: input, shape index: {}]   ;;  %s3064_s7 = inlined_call_operand.vmem [shape: f32[1,96], index: 7, kind: input, shape index: {}]   ;;  %s3065_s8 = inlined_call_operand.vmem [shape: f32[1,96], index: 8, kind: input, shape index: {}]   ;;  %s3066_s9 = inlined_call_operand.vmem [shape: f32[32,4], index: 9, kind: input, shape index: {}]   ;;  %s3067_s10 = inlined_call_operand.vmem [shape: f32[1,4], index: 10, kind: input, shape index: {}]   ;;  %s3068_s11 = inlined_call_operand.vmem [shape: f32[16,4], index: 11, kind: output, shape index: {}]  }
   0x1   :  { %17 = vsyncpa [#allocation7], 0  ;;  %s2607_s17 = smov [#allocation6]   ;;  %s2608_s19 = smov [#allocation4]  }
   0x2   :  { %s40_s18 = sshll.u32 %s2607_s17, 4  ;;  %s26_s20 = sshll.u32 %s2608_s19, 4  ;;  %s41_s18 = int_to_ptr.vmem [resolvable:$true] %s40_s18  ;;  %s27_s20 = int_to_ptr.vmem [resolvable:$true] %s26_s20 }
   0x3   :  { %s2551_s21 = scalar_lea.vmem %s41_s18, 16  ;;  %s2555_s22 = scalar_lea.vmem %s41_s18, 32 }
   0x4   :  { %p2552_p0 = scmp.ne.s32.totalorder %s41_s18, %s2551_s21  ;;  %p2556_p1 = scmp.lt.s32.totalorder %s41_s18, %s41_s18 }
   0x5   :  { %p2557_p2 = scmp.lt.s32.totalorder %s2555_s22, %s2551_s21 }
   0x7   :  { %p2558_p3 = por %p2557_p2, %p2556_p1 }
   0x9   :  { %p2559_p4 = pnand %p2558_p3, %p2552_p0 }
   0xb   :  { %2562 = shalt.err (!%p2559_p4)
}
   0xc   :  { %43 = dma.hbm_to_vmem [thread:$0]  %s3061_s4, 16, %s41_s18, [#allocation7]  }
   0xd   :  { %s2571_s25 = scalar_lea.vmem %s27_s20, 128  ;;  %p2576_p6 = scmp.lt.s32.totalorder %s27_s20, %s27_s20 }
   0xe   :  { %p2572_p5 = scmp.ne.s32.totalorder %s27_s20, %s2571_s25  ;;  %p2577_p7 = scmp.lt.s32.totalorder %s2571_s25, %s2571_s25 }
  0x10   :  { %p2578_p8 = por %p2577_p7, %p2576_p6 }
  0x12   :  { %p2579_p9 = pnand %p2578_p8, %p2572_p5 }
  0x14   :  { %2582 = shalt.err (!%p2579_p9)
}
  0x15   :  { %29 = dma.hbm_to_vmem [thread:$0]  %s3058_s1, 128, %s27_s20, [#allocation5]  }
  0x16   :  { %s2609_s28 = smov [#allocation8]  }
  0x17   :  { %s51_s29 = sshll.u32 %s2609_s28, 4  ;;  %s52_s29 = int_to_ptr.vmem [resolvable:$true] %s51_s29 }
  0x18   :  { %s2591_s30 = scalar_lea.vmem %s52_s29, 512  ;;  %p2596_p11 = scmp.lt.s32.totalorder %s52_s29, %s52_s29 }
  0x19   :  { %p2592_p10 = scmp.ne.s32.totalorder %s52_s29, %s2591_s30  ;;  %p2597_p12 = scmp.lt.s32.totalorder %s2591_s30, %s2591_s30 }
  0x1b   :  { %p2598_p13 = por %p2597_p12, %p2596_p11 }
  0x1d   :  { %p2599_p0 = pnand %p2598_p13, %p2592_p10 }
  0x1f   :  { %2602 = shalt.err (!%p2599_p0)
}
  0x20   :  { %s2610_s4 = smov 128   ;;  %s2611_s12 = smov 8  }
  0x21   :  { %57 = dma.hbm_to_vmem [thread:$0]  %s3063_s6, 512, %s52_s29, [#allocation7], %s2610_s4, %s2610_s4, %s2611_s12  }
  0x22   :  { %2603 = dma.done.wait [#allocation5], 128  }
  0x23   :  { %2604 = vsyncadd [#allocation5], 4294967168 }
  0x24   :  { %2605 = dma.done.wait [#allocation7], 528  }
  0x25   :  { %2606 = vsyncadd [#allocation7], 4294966768  ;;  %v2612_v0 = vmov 0.0   ;;  %vm2613_vm0 = vmmov 0   ;;  %vm90_vm1 = vcmask 64512   ;;  %v75_v1 = vld [vmem:[#allocation4] sm:$0xff] }
  0x26   :  { %2240 = vmatprep.subr.mxu1 %v2612_v0  ;;  %2248 = vmatprep.mubr.msk.f32.mxu1 %vm2613_vm0, %v2612_v0  ;;  %v2691_v2 = vld [vmem:[%s3059_s2 + $0x18] sm:$0xff]  ;;  %v82_v3 = vld [vmem:[%s3057_s0] sm:$0xff]  ;;  %v83_v4 = vld [vmem:[%s3057_s0 + $0x8] sm:$0xff]  ;;  %vm172_vm2 = vcmask 785408   ;;  %s2614_s25 = smov 64   ;;  %vm185_vm3 = vcmask 523264  }
  0x27   :  { %2235 = vmatprep.subr.mxu0 %v75_v1  ;;  %2241 = vmatpush3.msra.mxu1 %v2691_v2  ;;  %v2703_v5 = vld [vmem:[%s3059_s2 + $0x10] sm:$0xff]  ;;  %v2709_v6 = vld [vmem:[%s3059_s2 + $0x8] sm:$0xff]  ;;  %v2717_v7 = vld [vmem:[%s3059_s2] sm:$0xff]  ;;  %vm294_vm4 = vcmask 254976   ;;  %vm189_vm5 = vcmask 261120   ;;  %vm2090_vm6 = vcmask 31744  }
  0x28   :  { %2236 = vmatpush3.msra.mxu0 %v75_v1  ;;  %2237 = vmatprep.mubr.msk.f32.mxu0 %vm90_vm1, %v82_v3  ;;  %v2099_v9 = vld [vmem:[%s3060_s3] ss:$0 sm:$0xff]  ;;  %v2748_v13 = vld [vmem:[#allocation6] ss:$0 sm:$0xff]  ;;  %s2615_s3 = smov 96  }
  0x29   :  { %2242 = vmatprep.subr.mxu1 %v2612_v0  ;;  %2238 = vmatmul.mubr.msk.f32.vlgmr.msra.gmra.mxu0 %vm90_vm1, %v83_v4 }
  0x2a   :  { %2243 = vmatpush3.msra.mxu1 %v2703_v5  ;;  %2251 = vmatprep.subr.mxu0 %v2612_v0 }
  0x2b   :  { %2244 = vmatprep.subr.mxu1 %v2612_v0  ;;  %2252 = vmatpush3.msra.mxu0 %v2691_v2 }
  0x2c   :  { %2245 = vmatpush3.msra.mxu1 %v2709_v6  ;;  %2253 = vmatprep.subr.mxu0 %v2612_v0 }
  0x2d   :  { %2246 = vmatprep.subr.mxu1 %v2612_v0  ;;  %2254 = vmatpush3.msra.mxu0 %v2703_v5 }
  0x2e   :  { %2247 = vmatpush3.msra.mxu1 %v2717_v7  ;;  %2255 = vmatprep.subr.mxu0 %v2612_v0 }
  0x2f   :  { %2249 = vmatmul.mubr.f32.vlgmr.msra.gmra.mxu1 %v2612_v0  ;;  %2256 = vmatpush3.msra.mxu0 %v2709_v6 }
  0x30   :  { %2257 = vmatprep.subr.mxu0 %v2612_v0  ;;  %2259 = vmatprep.mubr.msk.f32.mxu0 %vm2613_vm0, %v2612_v0 }
  0x31   :  { %2258 = vmatpush3.msra.mxu0 %v2717_v7  ;;  %2262 = vmatprep.subr.mxu1 %v2612_v0 }
  0x32   :  { %2263 = vmatpush3.msra.mxu1 %v2691_v2  ;;  %2270 = vmatprep.mubr.msk.f32.mxu1 %vm2613_vm0, %v2612_v0 }
  0x33   :  { %2264 = vmatprep.subr.mxu1 %v2612_v0  ;;  %2273 = vmatprep.subr.mxu0 %v2612_v0 }
  0x34   :  { %2265 = vmatpush3.msra.mxu1 %v2703_v5 }
  0x35   :  { %2266 = vmatprep.subr.mxu1 %v2612_v0 }
  0x36   :  { %2267 = vmatpush3.msra.mxu1 %v2709_v6 }
  0x37   :  { %2268 = vmatprep.subr.mxu1 %v2612_v0 }
  0x38   :  { %2269 = vmatpush3.msra.mxu1 %v2717_v7 }
  0x39   :  { %2284 = vmatprep.subr.mxu1 %v2612_v0 }
  0xe9   :  { %v2239_v8 = vpop.f32.mrf.mxu0 }
  0xea   :  { %v169_v10 = vadd.f32 %v2239_v8, %v2099_v9 }
  0xeb   :  { %v163_v11 = vpop.f32.mrf.mxu0 }
  0xec   :  { %174 = vst.msk [vmem:[#allocation2 + $0x8] sm:$0xff] %vm172_vm2, %v169_v10  ;;  %v164_v12 = vadd.f32 %v2099_v9, %v163_v11 }
  0xee   :  { %173 = vst.msk [vmem:[#allocation2] sm:$0xff] %vm172_vm2, %v164_v12 }
  0xef   :  { %v259_v14 = vpop.f32.mrf.mxu1 }
  0xf0   :  { %v270_v15 = vadd.f32 %v2748_v13, %v259_v14 }
  0xf1   :  { %v2250_v16 = vpop.f32.mrf.mxu1 }
  0xf2   :  { %272 = vrot.lane.b32.xlu0 %v270_v15, %s2614_s25 }
  0xf3   :  { %v176_v17 = vld [vmem:[#allocation2 + $0x8] sm:$0xff] }
  0xf4   :  { %v184_v18 = vadd.f32 %v2748_v13, %v176_v17 }
  0xf5   :  { %v175_v19 = vld [vmem:[#allocation2] sm:$0xff] }
  0xf6   :  { %187 = vst.msk [vmem:[#allocation2 + $0x8] sm:$0xff] %vm185_vm3, %v184_v18  ;;  %v183_v20 = vadd.f32 %v2748_v13, %v175_v19 }
  0xf8   :  { %186 = vst.msk [vmem:[#allocation2] sm:$0xff] %vm185_vm3, %v183_v20 }
  0xff   :  { %v188_v21 = vld [vmem:[#allocation2] sm:$0x3]  ;;  %v297_v41 = vld [vmem:[#allocation2 + $0x2] sm:$0x3]  ;;  %v404_v61 = vld [vmem:[#allocation2 + $0x4] sm:$0x3] }
 0x100   :  { %v263_v22 = vadd.f32 %v259_v14, %v188_v21 }
 0x102   :  { %v2103_v23 = vmul.f32 -1.442695, %v263_v22 }
 0x104   :  { %2447 = vpow2.f32 %v2103_v23  ;;  %v511_v23 = vld [vmem:[#allocation2 + $0x6] sm:$0x3] }
 0x111   :  { %v2448_v24 = vpop.eup %2447 }
 0x112   :  { %v267_v25 = vadd.f32 1.0, %v2448_v24 }
 0x114   :  { %2449 = vrcp.f32 %v267_v25 }
 0x121   :  { %v2450_v26 = vpop.eup %2449 }
 0x122   :  { %v282_v32 = vsub.f32 1.0, %v2450_v26  ;;  %v288_v34 = vmul.f32 0.0, %v2450_v26 }
 0x164   :  { %v273_v27 = vpop.permute.xlu0 %272 }
 0x165   :  { %v275_v28 = vmul.f32 %v2450_v26, %v273_v27 }
 0x167   :  { %277 = vrot.lane.b32.xlu0 %v275_v28, %s2614_s25 }
 0x1d9   :  { %v278_v29 = vpop.permute.xlu0 %277 }
 0x1da   :  { %v280_v30 = vadd.f32 %v278_v29, %v188_v21 }
 0x1dc   :  { %2451 = vtanh.f32 %v280_v30 }
 0x1e9   :  { %v2452_v31 = vpop.eup %2451 }
 0x1ea   :  { %284 = vrot.lane.b32.xlu1 %v2452_v31, %s2615_s3 }
 0x25c   :  { %v285_v33 = vpop.permute.xlu1 %284 }
 0x25d   :  { %v287_v35 = vmul.f32 %v285_v33, %v282_v32 }
 0x25f   :  { %v289_v36 = vadd.f32 %v288_v34, %v287_v35 }
 0x261   :  { %291 = vrot.lane.b32.xlu1 %v289_v36, %s2615_s3 }
 0x2d3   :  { %v292_v37 = vpop.permute.xlu1 %291 }
 0x2d4   :  { %295 = vst.msk [vmem:[#allocation3] sm:$0x3] %vm294_vm4, %v292_v37  ;;  %2260 = vmatmul.mubr.msk.f32.vlgmr.msra.gmra.mxu0 %vm189_vm5, %v292_v37 }
 0x2d5   :  { %2274 = vmatpush3.msra.mxu0 %v2691_v2  ;;  %2281 = vmatprep.mubr.msk.f32.mxu0 %vm2613_vm0, %v2612_v0 }
 0x2d6   :  { %2275 = vmatprep.subr.mxu0 %v2612_v0 }
 0x2d7   :  { %2276 = vmatpush3.msra.mxu0 %v2703_v5 }
 0x2d8   :  { %2277 = vmatprep.subr.mxu0 %v2612_v0 }
 0x2d9   :  { %2278 = vmatpush3.msra.mxu0 %v2709_v6 }
 0x2da   :  { %2279 = vmatprep.subr.mxu0 %v2612_v0 }
 0x2db   :  { %2280 = vmatpush3.msra.mxu0 %v2717_v7 }
 0x2dc   :  { %2295 = vmatprep.subr.mxu0 %v2612_v0 }
 0x394   :  { %v366_v38 = vpop.f32.mrf.mxu0 }
 0x395   :  { %v377_v39 = vadd.f32 %v2748_v13, %v366_v38  ;;  %v370_v42 = vadd.f32 %v366_v38, %v297_v41 }
 0x396   :  { %v2261_v40 = vpop.f32.mrf.mxu0 }
 0x397   :  { %379 = vrot.lane.b32.xlu0 %v377_v39, %s2614_s25  ;;  %v2105_v43 = vmul.f32 -1.442695, %v370_v42 }
 0x399   :  { %2453 = vpow2.f32 %v2105_v43  ;;  %v618_v43 = vld [vmem:[#allocation2 + $0x8] sm:$0x3] }
 0x3a6   :  { %v2454_v44 = vpop.eup %2453 }
 0x3a7   :  { %v374_v45 = vadd.f32 1.0, %v2454_v44 }
 0x3a9   :  { %2455 = vrcp.f32 %v374_v45 }
 0x3b6   :  { %v2456_v46 = vpop.eup %2455 }
 0x3b7   :  { %v389_v52 = vsub.f32 1.0, %v2456_v46  ;;  %v395_v54 = vmul.f32 %v2456_v46, %v289_v36 }
 0x409   :  { %v380_v47 = vpop.permute.xlu0 %379 }
 0x40a   :  { %v382_v48 = vmul.f32 %v2456_v46, %v380_v47 }
 0x40c   :  { %384 = vrot.lane.b32.xlu1 %v382_v48, %s2614_s25 }
 0x47e   :  { %v385_v49 = vpop.permute.xlu1 %384 }
 0x47f   :  { %v387_v50 = vadd.f32 %v385_v49, %v297_v41 }
 0x481   :  { %2457 = vtanh.f32 %v387_v50 }
 0x48e   :  { %v2458_v51 = vpop.eup %2457 }
 0x48f   :  { %391 = vrot.lane.b32.xlu0 %v2458_v51, %s2615_s3 }
 0x501   :  { %v392_v53 = vpop.permute.xlu0 %391 }
 0x502   :  { %v394_v55 = vmul.f32 %v392_v53, %v389_v52 }
 0x504   :  { %v396_v56 = vadd.f32 %v395_v54, %v394_v55 }
 0x506   :  { %398 = vrot.lane.b32.xlu1 %v396_v56, %s2615_s3 }
 0x578   :  { %v399_v57 = vpop.permute.xlu1 %398 }
 0x579   :  { %402 = vst.msk [vmem:[#allocation3 + $0x2] sm:$0x3] %vm294_vm4, %v399_v57  ;;  %2271 = vmatmul.mubr.msk.f32.vlgmr.msra.gmra.mxu1 %vm189_vm5, %v399_v57 }
 0x57a   :  { %2285 = vmatpush3.msra.mxu1 %v2691_v2  ;;  %2292 = vmatprep.mubr.msk.f32.mxu1 %vm2613_vm0, %v2612_v0 }
 0x57b   :  { %2286 = vmatprep.subr.mxu1 %v2612_v0 }
 0x57c   :  { %2287 = vmatpush3.msra.mxu1 %v2703_v5 }
 0x57d   :  { %2288 = vmatprep.subr.mxu1 %v2612_v0 }
 0x57e   :  { %2289 = vmatpush3.msra.mxu1 %v2709_v6 }
 0x57f   :  { %2290 = vmatprep.subr.mxu1 %v2612_v0 }
 0x580   :  { %2291 = vmatpush3.msra.mxu1 %v2717_v7 }
 0x581   :  { %2306 = vmatprep.subr.mxu1 %v2612_v0 }
 0x639   :  { %v473_v58 = vpop.f32.mrf.mxu1 }
 0x63a   :  { %v484_v59 = vadd.f32 %v2748_v13, %v473_v58  ;;  %v477_v62 = vadd.f32 %v473_v58, %v404_v61 }
 0x63b   :  { %v2272_v60 = vpop.f32.mrf.mxu1 }
 0x63c   :  { %486 = vrot.lane.b32.xlu0 %v484_v59, %s2614_s25  ;;  %v2107_v63 = vmul.f32 -1.442695, %v477_v62  ;;  %v725_v62 = vld [vmem:[#allocation2 + $0xa] sm:$0x3] }
 0x63e   :  { %2459 = vpow2.f32 %v2107_v63 }
 0x64b   :  { %v2460_v1 = vpop.eup %2459 }
 0x64c   :  { %v481_v3 = vadd.f32 1.0, %v2460_v1 }
 0x64e   :  { %2461 = vrcp.f32 %v481_v3 }
 0x65b   :  { %v2462_v4 = vpop.eup %2461 }
 0x65c   :  { %v496_v14 = vsub.f32 1.0, %v2462_v4  ;;  %v502_v16 = vmul.f32 %v2462_v4, %v396_v56 }
 0x6ae   :  { %v487_v8 = vpop.permute.xlu0 %486 }
 0x6af   :  { %v489_v9 = vmul.f32 %v2462_v4, %v487_v8 }
 0x6b1   :  { %491 = vrot.lane.b32.xlu1 %v489_v9, %s2614_s25 }
 0x723   :  { %v492_v10 = vpop.permute.xlu1 %491 }
 0x724   :  { %v494_v11 = vadd.f32 %v492_v10, %v404_v61 }
 0x726   :  { %2463 = vtanh.f32 %v494_v11 }
 0x733   :  { %v2464_v12 = vpop.eup %2463 }
 0x734   :  { %498 = vrot.lane.b32.xlu0 %v2464_v12, %s2615_s3 }
 0x7a6   :  { %v499_v15 = vpop.permute.xlu0 %498 }
 0x7a7   :  { %v501_v17 = vmul.f32 %v499_v15, %v496_v14 }
 0x7a9   :  { %v503_v18 = vadd.f32 %v502_v16, %v501_v17 }
 0x7ab   :  { %505 = vrot.lane.b32.xlu1 %v503_v18, %s2615_s3 }
 0x81d   :  { %v506_v19 = vpop.permute.xlu1 %505 }
 0x81e   :  { %509 = vst.msk [vmem:[#allocation3 + $0x4] sm:$0x3] %vm294_vm4, %v506_v19  ;;  %2282 = vmatmul.mubr.msk.f32.vlgmr.msra.gmra.mxu0 %vm189_vm5, %v506_v19 }
 0x81f   :  { %2296 = vmatpush3.msra.mxu0 %v2691_v2  ;;  %2303 = vmatprep.mubr.msk.f32.mxu0 %vm2613_vm0, %v2612_v0 }
 0x820   :  { %2297 = vmatprep.subr.mxu0 %v2612_v0 }
 0x821   :  { %2298 = vmatpush3.msra.mxu0 %v2703_v5 }
 0x822   :  { %2299 = vmatprep.subr.mxu0 %v2612_v0 }
 0x823   :  { %2300 = vmatpush3.msra.mxu0 %v2709_v6 }
 0x824   :  { %2301 = vmatprep.subr.mxu0 %v2612_v0 }
 0x825   :  { %2302 = vmatpush3.msra.mxu0 %v2717_v7 }
 0x826   :  { %2317 = vmatprep.subr.mxu0 %v2612_v0 }
 0x8de   :  { %v580_v20 = vpop.f32.mrf.mxu0 }
 0x8df   :  { %v591_v21 = vadd.f32 %v2748_v13, %v580_v20  ;;  %v584_v24 = vadd.f32 %v580_v20, %v511_v23 }
 0x8e0   :  { %v2283_v22 = vpop.f32.mrf.mxu0 }
 0x8e1   :  { %593 = vrot.lane.b32.xlu0 %v591_v21, %s2614_s25  ;;  %v2109_v25 = vmul.f32 -1.442695, %v584_v24  ;;  %v832_v22 = vld [vmem:[#allocation2 + $0xc] sm:$0x3] }
 0x8e3   :  { %2465 = vpow2.f32 %v2109_v25 }
 0x8f0   :  { %v2466_v26 = vpop.eup %2465 }
 0x8f1   :  { %v588_v27 = vadd.f32 1.0, %v2466_v26 }
 0x8f3   :  { %2467 = vrcp.f32 %v588_v27 }
 0x900   :  { %v2468_v28 = vpop.eup %2467 }
 0x901   :  { %v603_v34 = vsub.f32 1.0, %v2468_v28  ;;  %v609_v36 = vmul.f32 %v2468_v28, %v503_v18 }
 0x953   :  { %v594_v29 = vpop.permute.xlu0 %593 }
 0x954   :  { %v596_v30 = vmul.f32 %v2468_v28, %v594_v29 }
 0x956   :  { %598 = vrot.lane.b32.xlu1 %v596_v30, %s2614_s25 }
 0x9c8   :  { %v599_v31 = vpop.permute.xlu1 %598 }
 0x9c9   :  { %v601_v32 = vadd.f32 %v599_v31, %v511_v23 }
 0x9cb   :  { %2469 = vtanh.f32 %v601_v32 }
 0x9d8   :  { %v2470_v33 = vpop.eup %2469 }
 0x9d9   :  { %605 = vrot.lane.b32.xlu0 %v2470_v33, %s2615_s3 }
 0xa4b   :  { %v606_v35 = vpop.permute.xlu0 %605 }
 0xa4c   :  { %v608_v37 = vmul.f32 %v606_v35, %v603_v34 }
 0xa4e   :  { %v610_v38 = vadd.f32 %v609_v36, %v608_v37 }
 0xa50   :  { %612 = vrot.lane.b32.xlu1 %v610_v38, %s2615_s3 }
 0xac2   :  { %v613_v39 = vpop.permute.xlu1 %612 }
 0xac3   :  { %616 = vst.msk [vmem:[#allocation3 + $0x6] sm:$0x3] %vm294_vm4, %v613_v39  ;;  %2293 = vmatmul.mubr.msk.f32.vlgmr.msra.gmra.mxu1 %vm189_vm5, %v613_v39 }
 0xac4   :  { %2307 = vmatpush3.msra.mxu1 %v2691_v2  ;;  %2314 = vmatprep.mubr.msk.f32.mxu1 %vm2613_vm0, %v2612_v0 }
 0xac5   :  { %2308 = vmatprep.subr.mxu1 %v2612_v0 }
 0xac6   :  { %2309 = vmatpush3.msra.mxu1 %v2703_v5 }
 0xac7   :  { %2310 = vmatprep.subr.mxu1 %v2612_v0 }
 0xac8   :  { %2311 = vmatpush3.msra.mxu1 %v2709_v6 }
 0xac9   :  { %2312 = vmatprep.subr.mxu1 %v2612_v0 }
 0xaca   :  { %2313 = vmatpush3.msra.mxu1 %v2717_v7  ;;  %v1055_v18 = vld [vmem:[#allocation3] sm:$0xff] }
 0xb83   :  { %v687_v40 = vpop.f32.mrf.mxu1 }
 0xb84   :  { %v698_v41 = vadd.f32 %v2748_v13, %v687_v40  ;;  %v691_v44 = vadd.f32 %v687_v40, %v618_v43 }
 0xb85   :  { %v2294_v42 = vpop.f32.mrf.mxu1 }
 0xb86   :  { %700 = vrot.lane.b32.xlu0 %v698_v41, %s2614_s25  ;;  %v2111_v45 = vmul.f32 -1.442695, %v691_v44  ;;  %v939_v42 = vld [vmem:[#allocation2 + $0xe] sm:$0x3] }
 0xb88   :  { %2471 = vpow2.f32 %v2111_v45 }
 0xb95   :  { %v2472_v46 = vpop.eup %2471 }
 0xb96   :  { %v695_v47 = vadd.f32 1.0, %v2472_v46 }
 0xb98   :  { %2473 = vrcp.f32 %v695_v47 }
 0xba5   :  { %v2474_v48 = vpop.eup %2473 }
 0xba6   :  { %v710_v54 = vsub.f32 1.0, %v2474_v48  ;;  %v716_v56 = vmul.f32 %v2474_v48, %v610_v38 }
 0xbf8   :  { %v701_v49 = vpop.permute.xlu0 %700 }
 0xbf9   :  { %v703_v50 = vmul.f32 %v2474_v48, %v701_v49 }
 0xbfb   :  { %705 = vrot.lane.b32.xlu1 %v703_v50, %s2614_s25 }
 0xc6d   :  { %v706_v51 = vpop.permute.xlu1 %705 }
 0xc6e   :  { %v708_v52 = vadd.f32 %v706_v51, %v618_v43 }
 0xc70   :  { %2475 = vtanh.f32 %v708_v52  ;;  %v2862_v52 = vld [vmem:[#allocation8 + $0x18] sm:$0xff] }
 0xc7d   :  { %v2476_v53 = vpop.eup %2475 }
 0xc7e   :  { %712 = vrot.lane.b32.xlu0 %v2476_v53, %s2615_s3  ;;  %v2868_v53 = vld [vmem:[#allocation8 + $0x8] sm:$0xff] }
 0xcf0   :  { %v713_v55 = vpop.permute.xlu0 %712 }
 0xcf1   :  { %v715_v57 = vmul.f32 %v713_v55, %v710_v54  ;;  %v2872_v54 = vld [vmem:[#allocation8] sm:$0xff] }
 0xcf3   :  { %v717_v58 = vadd.f32 %v716_v56, %v715_v57  ;;  %v1048_v56 = vld [vmem:[%s3062_s5 + $0x18] sm:$0xff]  ;;  %v1047_v57 = vld [vmem:[%s3062_s5 + $0x10] sm:$0xff] }
 0xcf4   :  { %2328 = vmatprep.subr.mxu1 %v1048_v56 }
 0xcf5   :  { %719 = vrot.lane.b32.xlu1 %v717_v58, %s2615_s3 }
 0xd67   :  { %v720_v59 = vpop.permute.xlu1 %719 }
 0xd68   :  { %723 = vst.msk [vmem:[#allocation3 + $0x8] sm:$0x3] %vm294_vm4, %v720_v59  ;;  %2304 = vmatmul.mubr.msk.f32.vlgmr.msra.gmra.mxu0 %vm189_vm5, %v720_v59  ;;  %v1045_v59 = vld [vmem:[%s3062_s5] sm:$0xff] }
 0xd69   :  { %2318 = vmatpush3.msra.mxu0 %v2691_v2  ;;  %2325 = vmatprep.mubr.msk.f32.mxu0 %vm2613_vm0, %v2612_v0 }
 0xd6a   :  { %2319 = vmatprep.subr.mxu0 %v2612_v0 }
 0xd6b   :  { %2320 = vmatpush3.msra.mxu0 %v2703_v5 }
 0xd6c   :  { %2321 = vmatprep.subr.mxu0 %v2612_v0 }
 0xd6d   :  { %2322 = vmatpush3.msra.mxu0 %v2709_v6 }
 0xd6e   :  { %2323 = vmatprep.subr.mxu0 %v2612_v0 }
 0xd6f   :  { %2324 = vmatpush3.msra.mxu0 %v2717_v7 }
 0xd70   :  { %2339 = vmatprep.subr.mxu0 %v2612_v0 }
 0xe28   :  { %v794_v60 = vpop.f32.mrf.mxu0 }
 0xe29   :  { %v805_v2 = vadd.f32 %v2748_v13, %v794_v60  ;;  %v798_v63 = vadd.f32 %v794_v60, %v725_v62 }
 0xe2a   :  { %v2305_v61 = vpop.f32.mrf.mxu0 }
 0xe2b   :  { %807 = vrot.lane.b32.xlu0 %v805_v2, %s2614_s25  ;;  %v2113_v1 = vmul.f32 -1.442695, %v798_v63 }
 0xe2d   :  { %2477 = vpow2.f32 %v2113_v1  ;;  %v2908_v1 = vld [vmem:[%s3065_s8] ss:$0 sm:$0xff] }
 0xe3a   :  { %v2478_v5 = vpop.eup %2477 }
 0xe3b   :  { %v802_v3 = vadd.f32 1.0, %v2478_v5 }
 0xe3d   :  { %2479 = vrcp.f32 %v802_v3 }
 0xe4a   :  { %v2480_v6 = vpop.eup %2479 }
 0xe4b   :  { %v817_v11 = vsub.f32 1.0, %v2480_v6  ;;  %v823_v14 = vmul.f32 %v2480_v6, %v717_v58  ;;  %v1046_v58 = vld [vmem:[%s3062_s5 + $0x8] sm:$0xff] }
 0xe9d   :  { %v808_v4 = vpop.permute.xlu0 %807 }
 0xe9e   :  { %v810_v8 = vmul.f32 %v2480_v6, %v808_v4 }
 0xea0   :  { %812 = vrot.lane.b32.xlu1 %v810_v8, %s2614_s25 }
 0xf12   :  { %v813_v7 = vpop.permute.xlu1 %812 }
 0xf13   :  { %v815_v9 = vadd.f32 %v813_v7, %v725_v62  ;;  %v2118_v7 = vld [vmem:[%s3064_s7] ss:$0 sm:$0xff] }
 0xf15   :  { %2481 = vtanh.f32 %v815_v9 }
 0xf22   :  { %v2482_v10 = vpop.eup %2481 }
 0xf23   :  { %819 = vrot.lane.b32.xlu0 %v2482_v10, %s2615_s3 }
 0xf95   :  { %v820_v12 = vpop.permute.xlu0 %819 }
 0xf96   :  { %v822_v15 = vmul.f32 %v820_v12, %v817_v11 }
 0xf98   :  { %v824_v16 = vadd.f32 %v823_v14, %v822_v15 }
 0xf9a   :  { %826 = vrot.lane.b32.xlu1 %v824_v16, %s2615_s3 }
0x100c   :  { %v827_v17 = vpop.permute.xlu1 %826 }
0x100d   :  { %830 = vst.msk [vmem:[#allocation3 + $0xa] sm:$0x3] %vm294_vm4, %v827_v17  ;;  %2315 = vmatmul.mubr.msk.f32.vlgmr.msra.gmra.mxu1 %vm189_vm5, %v827_v17 }
0x100e   :  { %2336 = vmatprep.mubr.msk.f32.mxu1 %vm189_vm5, %v1055_v18  ;;  %2329 = vmatpush3.msra.mxu1 %v1048_v56 }
0x100f   :  { %2330 = vmatprep.subr.mxu1 %v1047_v57 }
0x1010   :  { %2331 = vmatpush3.msra.mxu1 %v1047_v57 }
0x1011   :  { %2332 = vmatprep.subr.mxu1 %v1046_v58 }
0x1012   :  { %2333 = vmatpush3.msra.mxu1 %v1046_v58 }
0x1013   :  { %2334 = vmatprep.subr.mxu1 %v1045_v59 }
0x1014   :  { %2335 = vmatpush3.msra.mxu1 %v1045_v59 }
0x1015   :  { %2350 = vmatprep.subr.mxu1 %v2612_v0 }
0x10cd   :  { %v901_v19 = vpop.f32.mrf.mxu1 }
0x10ce   :  { %v912_v20 = vadd.f32 %v2748_v13, %v901_v19  ;;  %v905_v23 = vadd.f32 %v901_v19, %v832_v22 }
0x10cf   :  { %v2316_v21 = vpop.f32.mrf.mxu1 }
0x10d0   :  { %914 = vrot.lane.b32.xlu0 %v912_v20, %s2614_s25  ;;  %v2115_v24 = vmul.f32 -1.442695, %v905_v23 }
0x10d2   :  { %2483 = vpow2.f32 %v2115_v24 }
0x10df   :  { %v2484_v25 = vpop.eup %2483 }
0x10e0   :  { %v909_v26 = vadd.f32 1.0, %v2484_v25 }
0x10e2   :  { %2485 = vrcp.f32 %v909_v26 }
0x10ef   :  { %v2486_v27 = vpop.eup %2485 }
0x10f0   :  { %v924_v33 = vsub.f32 1.0, %v2486_v27  ;;  %v930_v35 = vmul.f32 %v2486_v27, %v824_v16 }
0x1142   :  { %v915_v28 = vpop.permute.xlu0 %914 }
0x1143   :  { %v917_v29 = vmul.f32 %v2486_v27, %v915_v28 }
0x1145   :  { %919 = vrot.lane.b32.xlu1 %v917_v29, %s2614_s25 }
0x11b7   :  { %v920_v30 = vpop.permute.xlu1 %919 }
0x11b8   :  { %v922_v31 = vadd.f32 %v920_v30, %v832_v22 }
0x11ba   :  { %2487 = vtanh.f32 %v922_v31 }
0x11c7   :  { %v2488_v32 = vpop.eup %2487 }
0x11c8   :  { %926 = vrot.lane.b32.xlu0 %v2488_v32, %s2615_s3 }
0x123a   :  { %v927_v34 = vpop.permute.xlu0 %926 }
0x123b   :  { %v929_v36 = vmul.f32 %v927_v34, %v924_v33 }
0x123d   :  { %v2851_v37 = vadd.f32 %v930_v35, %v929_v36 }
0x123f   :  { %933 = vrot.lane.b32.xlu1 %v2851_v37, %s2615_s3 }
0x12b1   :  { %v934_v38 = vpop.permute.xlu1 %933 }
0x12b2   :  { %937 = vst.msk [vmem:[#allocation3 + $0xc] sm:$0x3] %vm294_vm4, %v934_v38  ;;  %2326 = vmatmul.mubr.msk.f32.vlgmr.msra.gmra.mxu0 %vm189_vm5, %v934_v38 }
0x12b3   :  { %2347 = vmatprep.mubr.msk.f32.mxu0 %vm2613_vm0, %v2612_v0  ;;  %2340 = vmatpush3.msra.mxu0 %v2862_v52 }
0x12b4   :  { %2341 = vmatprep.subr.mxu0 %v2612_v0 }
0x1372   :  { %v1008_v39 = vpop.f32.mrf.mxu0 }
0x1373   :  { %v1019_v40 = vadd.f32 %v2748_v13, %v1008_v39  ;;  %v1012_v43 = vadd.f32 %v1008_v39, %v939_v42  ;;  %v2864_v13 = vld [vmem:[#allocation8 + $0x10] sm:$0xff] }
0x1374   :  { %v2327_v41 = vpop.f32.mrf.mxu0  ;;  %2342 = vmatpush3.msra.mxu0 %v2864_v13 }
0x1375   :  { %1021 = vrot.lane.b32.xlu0 %v1019_v40, %s2614_s25  ;;  %v2117_v44 = vmul.f32 -1.442695, %v1012_v43  ;;  %2343 = vmatprep.subr.mxu0 %v2612_v0 }
0x1376   :  { %2344 = vmatpush3.msra.mxu0 %v2868_v53 }
0x1377   :  { %2489 = vpow2.f32 %v2117_v44  ;;  %2345 = vmatprep.subr.mxu0 %v2612_v0 }
0x1378   :  { %2346 = vmatpush3.msra.mxu0 %v2872_v54 }
0x1379   :  { %2348 = vmatmul.mubr.f32.vlgmr.msra.gmra.mxu0 %v2612_v0  ;;  %2361 = vmatprep.subr.mxu0 %v2612_v0 }
0x137a   :  { %2362 = vmatpush3.msra.mxu0 %v2862_v52  ;;  %2369 = vmatprep.mubr.msk.f32.mxu0 %vm2613_vm0, %v2612_v0 }
0x137b   :  { %2363 = vmatprep.subr.mxu0 %v2612_v0 }
0x137c   :  { %2364 = vmatpush3.msra.mxu0 %v2864_v13 }
0x137d   :  { %2365 = vmatprep.subr.mxu0 %v2612_v0 }
0x137e   :  { %2366 = vmatpush3.msra.mxu0 %v2868_v53 }
0x137f   :  { %2367 = vmatprep.subr.mxu0 %v2612_v0 }
0x1380   :  { %2368 = vmatpush3.msra.mxu0 %v2872_v54 }
0x1381   :  { %2383 = vmatprep.subr.mxu0 %v2612_v0 }
0x1384   :  { %v2490_v45 = vpop.eup %2489 }
0x1385   :  { %v1016_v46 = vadd.f32 1.0, %v2490_v45 }
0x1387   :  { %2491 = vrcp.f32 %v1016_v46 }
0x1394   :  { %v2492_v47 = vpop.eup %2491 }
0x1395   :  { %v1031_v60 = vsub.f32 1.0, %v2492_v47  ;;  %v1037_v61 = vmul.f32 %v2492_v47, %v2851_v37 }
0x13e7   :  { %v1022_v48 = vpop.permute.xlu0 %1021 }
0x13e8   :  { %v1024_v49 = vmul.f32 %v2492_v47, %v1022_v48 }
0x13ea   :  { %1026 = vrot.lane.b32.xlu1 %v1024_v49, %s2614_s25 }
0x1439   :  { %v1225_v5 = vpop.f32.mrf.mxu0 }
0x143a   :  { %v1236_v3 = vadd.f32 %v2908_v1, %v1225_v5 }
0x143b   :  { %v2349_v6 = vpop.f32.mrf.mxu0 }
0x145c   :  { %v1027_v50 = vpop.permute.xlu1 %1026 }
0x145d   :  { %v1029_v51 = vadd.f32 %v1027_v50, %v939_v42 }
0x145f   :  { %2493 = vtanh.f32 %v1029_v51 }
0x146c   :  { %v2494_v55 = vpop.eup %2493 }
0x146d   :  { %1033 = vrot.lane.b32.xlu0 %v2494_v55, %s2615_s3 }
0x1471   :  { %1238 = vrot.lane.b32.xlu0 %v1236_v3, %s2614_s25 }
0x14df   :  { %v1034_v2 = vpop.permute.xlu0 %1033 }
0x14e0   :  { %v1036_v62 = vmul.f32 %v1034_v2, %v1031_v60 }
0x14e2   :  { %v1038_v63 = vadd.f32 %v1037_v61, %v1036_v62 }
0x14e3   :  { %v1239_v23 = vpop.permute.xlu0 %1238 }
0x14e4   :  { %1040 = vrot.lane.b32.xlu1 %v1038_v63, %s2615_s3 }
0x1556   :  { %v1041_v4 = vpop.permute.xlu1 %1040 }
0x1557   :  { %1044 = vst.msk [vmem:[#allocation3 + $0xe] sm:$0x3] %vm294_vm4, %v1041_v4 }
0x155e   :  { %v1056_v8 = vld [vmem:[#allocation3 + $0x8] sm:$0xff] }
0x155f   :  { %2337 = vmatmul.mubr.msk.f32.vlgmr.msra.gmra.mxu1 %vm189_vm5, %v1056_v8 }
0x1560   :  { %2351 = vmatpush3.msra.mxu1 %v2862_v52  ;;  %2358 = vmatprep.mubr.msk.f32.mxu1 %vm2613_vm0, %v2612_v0 }
0x1561   :  { %2352 = vmatprep.subr.mxu1 %v2612_v0 }
0x1562   :  { %2353 = vmatpush3.msra.mxu1 %v2864_v13 }
0x1563   :  { %2354 = vmatprep.subr.mxu1 %v2612_v0 }
0x1564   :  { %2355 = vmatpush3.msra.mxu1 %v2868_v53 }
0x1565   :  { %2356 = vmatprep.subr.mxu1 %v2612_v0 }
0x1566   :  { %2357 = vmatpush3.msra.mxu1 %v2872_v54 }
0x1567   :  { %2372 = vmatprep.subr.mxu1 %v2612_v0 }
0x161f   :  { %v2338_v9 = vpop.f32.mrf.mxu1 }
0x1620   :  { %v1141_v10 = vadd.f32 %v2338_v9, %v2118_v7 }
0x1621   :  { %v1135_v11 = vpop.f32.mrf.mxu1 }
0x1622   :  { %1145 = vst.msk [vmem:[#allocation2 + $0x8] sm:$0xff] %vm172_vm2, %v1141_v10  ;;  %v1136_v12 = vadd.f32 %v2118_v7, %v1135_v11 }
0x1624   :  { %1144 = vst.msk [vmem:[#allocation2] sm:$0xff] %vm172_vm2, %v1136_v12 }
0x1629   :  { %v1147_v14 = vld [vmem:[#allocation2 + $0x8] sm:$0xff] }
0x162a   :  { %v1155_v15 = vadd.f32 %v2908_v1, %v1147_v14 }
0x162b   :  { %v1146_v16 = vld [vmem:[#allocation2] sm:$0xff] }
0x162c   :  { %v1154_v17 = vadd.f32 %v2908_v1, %v1146_v16  ;;  %1157 = vst.msk [vmem:[#allocation2 + $0x8] sm:$0xff] %vm185_vm3, %v1155_v15 }
0x162e   :  { %1156 = vst.msk [vmem:[#allocation2] sm:$0xff] %vm185_vm3, %v1154_v17 }
0x1635   :  { %v1158_v18 = vld [vmem:[#allocation2] sm:$0x3]  ;;  %v1261_v38 = vld [vmem:[#allocation2 + $0x2] sm:$0x3]  ;;  %v1366_v2 = vld [vmem:[#allocation2 + $0x4] sm:$0x3] }
0x1636   :  { %v1229_v19 = vadd.f32 %v1225_v5, %v1158_v18 }
0x1638   :  { %v2122_v20 = vmul.f32 -1.442695, %v1229_v19 }
0x163a   :  { %2495 = vpow2.f32 %v2122_v20  ;;  %v1471_v20 = vld [vmem:[#allocation2 + $0x6] sm:$0x3] }
0x1647   :  { %v2496_v21 = vpop.eup %2495 }
0x1648   :  { %v1233_v22 = vadd.f32 1.0, %v2496_v21 }
0x164a   :  { %2497 = vrcp.f32 %v1233_v22 }
0x1657   :  { %v2498_v24 = vpop.eup %2497 }
0x1658   :  { %v1241_v25 = vmul.f32 %v2498_v24, %v1239_v23  ;;  %v1248_v29 = vsub.f32 1.0, %v2498_v24  ;;  %v1254_v31 = vmul.f32 0.0, %v2498_v24 }
0x165a   :  { %1243 = vrot.lane.b32.xlu1 %v1241_v25, %s2614_s25 }
0x16cc   :  { %v1244_v26 = vpop.permute.xlu1 %1243 }
0x16cd   :  { %v1246_v27 = vadd.f32 %v1244_v26, %v1158_v18 }
0x16cf   :  { %2499 = vtanh.f32 %v1246_v27 }
0x16dc   :  { %v2500_v28 = vpop.eup %2499 }
0x16dd   :  { %1250 = vrot.lane.b32.xlu0 %v2500_v28, %s2615_s3 }
0x174f   :  { %v1251_v30 = vpop.permute.xlu0 %1250 }
0x1750   :  { %v1253_v32 = vmul.f32 %v1251_v30, %v1248_v29 }
0x1752   :  { %v1255_v33 = vadd.f32 %v1254_v31, %v1253_v32 }
0x1754   :  { %1257 = vrot.lane.b32.xlu1 %v1255_v33, %s2615_s3 }
0x17c6   :  { %v1258_v34 = vpop.permute.xlu1 %1257 }
0x17c7   :  { %1260 = vst.msk [vmem:[#allocation3] sm:$0x3] %vm294_vm4, %v1258_v34  ;;  %2359 = vmatmul.mubr.msk.f32.vlgmr.msra.gmra.mxu1 %vm189_vm5, %v1258_v34 }
0x17c8   :  { %2373 = vmatpush3.msra.mxu1 %v2862_v52  ;;  %2380 = vmatprep.mubr.msk.f32.mxu1 %vm2613_vm0, %v2612_v0 }
0x17c9   :  { %2374 = vmatprep.subr.mxu1 %v2612_v0 }
0x17ca   :  { %2375 = vmatpush3.msra.mxu1 %v2864_v13 }
0x17cb   :  { %2376 = vmatprep.subr.mxu1 %v2612_v0 }
0x17cc   :  { %2377 = vmatpush3.msra.mxu1 %v2868_v53 }
0x17cd   :  { %2378 = vmatprep.subr.mxu1 %v2612_v0 }
0x17ce   :  { %2379 = vmatpush3.msra.mxu1 %v2872_v54 }
0x17cf   :  { %2394 = vmatprep.subr.mxu1 %v2612_v0 }
0x1887   :  { %v1330_v35 = vpop.f32.mrf.mxu1 }
0x1888   :  { %v1341_v36 = vadd.f32 %v2908_v1, %v1330_v35  ;;  %v1334_v39 = vadd.f32 %v1330_v35, %v1261_v38 }
0x1889   :  { %v2360_v37 = vpop.f32.mrf.mxu1 }
0x188a   :  { %1343 = vrot.lane.b32.xlu0 %v1341_v36, %s2614_s25  ;;  %v2124_v40 = vmul.f32 -1.442695, %v1334_v39 }
0x188c   :  { %2501 = vpow2.f32 %v2124_v40  ;;  %v1576_v40 = vld [vmem:[#allocation2 + $0x8] sm:$0x3] }
0x1899   :  { %v2502_v41 = vpop.eup %2501 }
0x189a   :  { %v1338_v42 = vadd.f32 1.0, %v2502_v41 }
0x189c   :  { %2503 = vrcp.f32 %v1338_v42 }
0x18a9   :  { %v2504_v43 = vpop.eup %2503 }
0x18aa   :  { %v1353_v49 = vsub.f32 1.0, %v2504_v43  ;;  %v1359_v51 = vmul.f32 %v2504_v43, %v1255_v33 }
0x18fc   :  { %v1344_v44 = vpop.permute.xlu0 %1343 }
0x18fd   :  { %v1346_v45 = vmul.f32 %v2504_v43, %v1344_v44 }
0x18ff   :  { %1348 = vrot.lane.b32.xlu1 %v1346_v45, %s2614_s25 }
0x1971   :  { %v1349_v46 = vpop.permute.xlu1 %1348 }
0x1972   :  { %v1351_v47 = vadd.f32 %v1349_v46, %v1261_v38 }
0x1974   :  { %2505 = vtanh.f32 %v1351_v47 }
0x1981   :  { %v2506_v48 = vpop.eup %2505 }
0x1982   :  { %1355 = vrot.lane.b32.xlu0 %v2506_v48, %s2615_s3 }
0x19f4   :  { %v1356_v50 = vpop.permute.xlu0 %1355 }
0x19f5   :  { %v1358_v55 = vmul.f32 %v1356_v50, %v1353_v49 }
0x19f7   :  { %v1360_v56 = vadd.f32 %v1359_v51, %v1358_v55 }
0x19f9   :  { %1362 = vrot.lane.b32.xlu1 %v1360_v56, %s2615_s3 }
0x1a6b   :  { %v1363_v57 = vpop.permute.xlu1 %1362 }
0x1a6c   :  { %1365 = vst.msk [vmem:[#allocation3 + $0x2] sm:$0x3] %vm294_vm4, %v1363_v57  ;;  %2370 = vmatmul.mubr.msk.f32.vlgmr.msra.gmra.mxu0 %vm189_vm5, %v1363_v57 }
0x1a6d   :  { %2384 = vmatpush3.msra.mxu0 %v2862_v52  ;;  %2391 = vmatprep.mubr.msk.f32.mxu0 %vm2613_vm0, %v2612_v0 }
0x1a6e   :  { %2385 = vmatprep.subr.mxu0 %v2612_v0 }
0x1a6f   :  { %2386 = vmatpush3.msra.mxu0 %v2864_v13 }
0x1a70   :  { %2387 = vmatprep.subr.mxu0 %v2612_v0 }
0x1a71   :  { %2388 = vmatpush3.msra.mxu0 %v2868_v53 }
0x1a72   :  { %2389 = vmatprep.subr.mxu0 %v2612_v0 }
0x1a73   :  { %2390 = vmatpush3.msra.mxu0 %v2872_v54 }
0x1a74   :  { %2405 = vmatprep.subr.mxu0 %v2612_v0 }
0x1b2c   :  { %v1435_v58 = vpop.f32.mrf.mxu0 }
0x1b2d   :  { %v1446_v59 = vadd.f32 %v2908_v1, %v1435_v58  ;;  %v1439_v61 = vadd.f32 %v1435_v58, %v1366_v2 }
0x1b2e   :  { %v2371_v60 = vpop.f32.mrf.mxu0 }
0x1b2f   :  { %1448 = vrot.lane.b32.xlu0 %v1446_v59, %s2614_s25  ;;  %v2126_v62 = vmul.f32 -1.442695, %v1439_v61 }
0x1b31   :  { %2507 = vpow2.f32 %v2126_v62 }
0x1b3e   :  { %v2508_v63 = vpop.eup %2507 }
0x1b3f   :  { %v1443_v5 = vadd.f32 1.0, %v2508_v63 }
0x1b41   :  { %2509 = vrcp.f32 %v1443_v5 }
0x1b4e   :  { %v2510_v3 = vpop.eup %2509 }
0x1b4f   :  { %v1458_v10 = vsub.f32 1.0, %v2510_v3  ;;  %v1464_v12 = vmul.f32 %v2510_v3, %v1360_v56 }
0x1ba1   :  { %v1449_v6 = vpop.permute.xlu0 %1448 }
0x1ba2   :  { %v1451_v4 = vmul.f32 %v2510_v3, %v1449_v6 }
0x1ba4   :  { %1453 = vrot.lane.b32.xlu1 %v1451_v4, %s2614_s25 }
0x1c16   :  { %v1454_v8 = vpop.permute.xlu1 %1453 }
0x1c17   :  { %v1456_v7 = vadd.f32 %v1454_v8, %v1366_v2 }
0x1c19   :  { %2511 = vtanh.f32 %v1456_v7 }
0x1c26   :  { %v2512_v9 = vpop.eup %2511 }
0x1c27   :  { %1460 = vrot.lane.b32.xlu0 %v2512_v9, %s2615_s3 }
0x1c99   :  { %v1461_v11 = vpop.permute.xlu0 %1460 }
0x1c9a   :  { %v1463_v14 = vmul.f32 %v1461_v11, %v1458_v10 }
0x1c9c   :  { %v1465_v15 = vadd.f32 %v1464_v12, %v1463_v14 }
0x1c9e   :  { %1467 = vrot.lane.b32.xlu1 %v1465_v15, %s2615_s3 }
0x1d10   :  { %v1468_v16 = vpop.permute.xlu1 %1467 }
0x1d11   :  { %1470 = vst.msk [vmem:[#allocation3 + $0x4] sm:$0x3] %vm294_vm4, %v1468_v16  ;;  %2381 = vmatmul.mubr.msk.f32.vlgmr.msra.gmra.mxu1 %vm189_vm5, %v1468_v16 }
0x1d12   :  { %2395 = vmatpush3.msra.mxu1 %v2862_v52  ;;  %2402 = vmatprep.mubr.msk.f32.mxu1 %vm2613_vm0, %v2612_v0 }
0x1d13   :  { %2396 = vmatprep.subr.mxu1 %v2612_v0 }
0x1d14   :  { %2397 = vmatpush3.msra.mxu1 %v2864_v13 }
0x1d15   :  { %2398 = vmatprep.subr.mxu1 %v2612_v0 }
0x1d16   :  { %2399 = vmatpush3.msra.mxu1 %v2868_v53 }
0x1d17   :  { %2400 = vmatprep.subr.mxu1 %v2612_v0 }
0x1d18   :  { %2401 = vmatpush3.msra.mxu1 %v2872_v54 }
0x1d19   :  { %2416 = vmatprep.subr.mxu1 %v2612_v0 }
0x1dd1   :  { %v1540_v17 = vpop.f32.mrf.mxu1 }
0x1dd2   :  { %v1551_v18 = vadd.f32 %v2908_v1, %v1540_v17  ;;  %v1544_v21 = vadd.f32 %v1540_v17, %v1471_v20 }
0x1dd3   :  { %v2382_v19 = vpop.f32.mrf.mxu1 }
0x1dd4   :  { %1553 = vrot.lane.b32.xlu0 %v1551_v18, %s2614_s25  ;;  %v2128_v22 = vmul.f32 -1.442695, %v1544_v21  ;;  %v1786_v18 = vld [vmem:[#allocation2 + $0xc] sm:$0x3] }
0x1dd6   :  { %2513 = vpow2.f32 %v2128_v22 }
0x1de3   :  { %v2514_v23 = vpop.eup %2513 }
0x1de4   :  { %v1548_v24 = vadd.f32 1.0, %v2514_v23 }
0x1de6   :  { %2515 = vrcp.f32 %v1548_v24 }
0x1df3   :  { %v2516_v25 = vpop.eup %2515 }
0x1df4   :  { %v1563_v31 = vsub.f32 1.0, %v2516_v25  ;;  %v1569_v33 = vmul.f32 %v2516_v25, %v1465_v15 }
0x1e46   :  { %v1554_v26 = vpop.permute.xlu0 %1553 }
0x1e47   :  { %v1556_v27 = vmul.f32 %v2516_v25, %v1554_v26 }
0x1e49   :  { %1558 = vrot.lane.b32.xlu1 %v1556_v27, %s2614_s25 }
0x1ebb   :  { %v1559_v28 = vpop.permute.xlu1 %1558 }
0x1ebc   :  { %v1561_v29 = vadd.f32 %v1559_v28, %v1471_v20 }
0x1ebe   :  { %2517 = vtanh.f32 %v1561_v29 }
0x1ecb   :  { %v2518_v30 = vpop.eup %2517 }
0x1ecc   :  { %1565 = vrot.lane.b32.xlu0 %v2518_v30, %s2615_s3 }
0x1f3e   :  { %v1566_v32 = vpop.permute.xlu0 %1565 }
0x1f3f   :  { %v1568_v34 = vmul.f32 %v1566_v32, %v1563_v31 }
0x1f41   :  { %v1570_v35 = vadd.f32 %v1569_v33, %v1568_v34 }
0x1f43   :  { %1572 = vrot.lane.b32.xlu1 %v1570_v35, %s2615_s3 }
0x1fb5   :  { %v1573_v36 = vpop.permute.xlu1 %1572 }
0x1fb6   :  { %1575 = vst.msk [vmem:[#allocation3 + $0x6] sm:$0x3] %vm294_vm4, %v1573_v36  ;;  %2392 = vmatmul.mubr.msk.f32.vlgmr.msra.gmra.mxu0 %vm189_vm5, %v1573_v36 }
0x1fb7   :  { %2406 = vmatpush3.msra.mxu0 %v2862_v52  ;;  %2413 = vmatprep.mubr.msk.f32.mxu0 %vm2613_vm0, %v2612_v0 }
0x1fb8   :  { %2407 = vmatprep.subr.mxu0 %v2612_v0 }
0x1fb9   :  { %2408 = vmatpush3.msra.mxu0 %v2864_v13 }
0x1fba   :  { %2409 = vmatprep.subr.mxu0 %v2612_v0 }
0x1fbb   :  { %2410 = vmatpush3.msra.mxu0 %v2868_v53 }
0x1fbc   :  { %2411 = vmatprep.subr.mxu0 %v2612_v0 }
0x1fbd   :  { %2412 = vmatpush3.msra.mxu0 %v2872_v54  ;;  %v1996_v14 = vld [vmem:[#allocation3] sm:$0xff] }
0x2076   :  { %v1645_v37 = vpop.f32.mrf.mxu0 }
0x2077   :  { %v1656_v38 = vadd.f32 %v2908_v1, %v1645_v37  ;;  %v1649_v41 = vadd.f32 %v1645_v37, %v1576_v40 }
0x2078   :  { %v2393_v39 = vpop.f32.mrf.mxu0 }
0x2079   :  { %1658 = vrot.lane.b32.xlu0 %v1656_v38, %s2614_s25  ;;  %v2130_v42 = vmul.f32 -1.442695, %v1649_v41  ;;  %v1891_v38 = vld [vmem:[#allocation2 + $0xe] sm:$0x3] }
0x207b   :  { %2519 = vpow2.f32 %v2130_v42 }
0x2088   :  { %v2520_v43 = vpop.eup %2519 }
0x2089   :  { %v1653_v44 = vadd.f32 1.0, %v2520_v43 }
0x208b   :  { %2521 = vrcp.f32 %v1653_v44 }
0x2098   :  { %v2522_v45 = vpop.eup %2521 }
0x2099   :  { %v1668_v51 = vsub.f32 1.0, %v2522_v45  ;;  %v1674_v56 = vmul.f32 %v2522_v45, %v1570_v35 }
0x20eb   :  { %v1659_v46 = vpop.permute.xlu0 %1658 }
0x20ec   :  { %v1661_v47 = vmul.f32 %v2522_v45, %v1659_v46 }
0x20ee   :  { %1663 = vrot.lane.b32.xlu1 %v1661_v47, %s2614_s25 }
0x2160   :  { %v1664_v48 = vpop.permute.xlu1 %1663 }
0x2161   :  { %v1666_v49 = vadd.f32 %v1664_v48, %v1576_v40 }
0x2163   :  { %2523 = vtanh.f32 %v1666_v49  ;;  %v2000_v49 = vld [vmem:[%s3066_s9 + $0x10] sm:$0xff] }
0x2170   :  { %v2524_v50 = vpop.eup %2523 }
0x2171   :  { %1670 = vrot.lane.b32.xlu0 %v2524_v50, %s2615_s3  ;;  %v1999_v50 = vld [vmem:[%s3066_s9 + $0x8] sm:$0xff] }
0x21e3   :  { %v1671_v55 = vpop.permute.xlu0 %1670 }
0x21e4   :  { %v1673_v57 = vmul.f32 %v1671_v55, %v1668_v51  ;;  %v1998_v51 = vld [vmem:[%s3066_s9] sm:$0xff] }
0x21e6   :  { %v1675_v58 = vadd.f32 %v1674_v56, %v1673_v57 }
0x21e8   :  { %1677 = vrot.lane.b32.xlu1 %v1675_v58, %s2615_s3 }
0x225a   :  { %v1678_v59 = vpop.permute.xlu1 %1677 }
0x225b   :  { %1680 = vst.msk [vmem:[#allocation3 + $0x8] sm:$0x3] %vm294_vm4, %v1678_v59  ;;  %2403 = vmatmul.mubr.msk.f32.vlgmr.msra.gmra.mxu1 %vm189_vm5, %v1678_v59 }
0x225c   :  { %2417 = vmatpush3.msra.mxu1 %v2862_v52  ;;  %2424 = vmatprep.mubr.msk.f32.mxu1 %vm2613_vm0, %v2612_v0  ;;  %v1681_v52 = vld [vmem:[#allocation2 + $0xa] sm:$0x3] }
0x225d   :  { %2418 = vmatprep.subr.mxu1 %v2612_v0 }
0x225e   :  { %2419 = vmatpush3.msra.mxu1 %v2864_v13 }
0x225f   :  { %2420 = vmatprep.subr.mxu1 %v2612_v0 }
0x2260   :  { %2421 = vmatpush3.msra.mxu1 %v2868_v53 }
0x2261   :  { %2422 = vmatprep.subr.mxu1 %v2612_v0 }
0x2262   :  { %2423 = vmatpush3.msra.mxu1 %v2872_v54 }
0x231b   :  { %v1750_v60 = vpop.f32.mrf.mxu1 }
0x231c   :  { %v1761_v2 = vadd.f32 %v2908_v1, %v1750_v60  ;;  %v1754_v62 = vadd.f32 %v1750_v60, %v1681_v52 }
0x231d   :  { %v2404_v61 = vpop.f32.mrf.mxu1 }
0x231e   :  { %1763 = vrot.lane.b32.xlu0 %v1761_v2, %s2614_s25  ;;  %v2132_v63 = vmul.f32 -1.442695, %v1754_v62  ;;  %v2137_v61 = vld [vmem:[%s3067_s10] ss:$0 sm:$0xff] }
0x2320   :  { %2525 = vpow2.f32 %v2132_v63 }
0x232d   :  { %v2526_v5 = vpop.eup %2525 }
0x232e   :  { %v1758_v13 = vadd.f32 1.0, %v2526_v5 }
0x2330   :  { %2527 = vrcp.f32 %v1758_v13 }
0x233d   :  { %v2528_v3 = vpop.eup %2527 }
0x233e   :  { %v1773_v8 = vsub.f32 1.0, %v2528_v3  ;;  %v1779_v9 = vmul.f32 %v2528_v3, %v1675_v58 }
0x2390   :  { %v1764_v6 = vpop.permute.xlu0 %1763 }
0x2391   :  { %v1766_v53 = vmul.f32 %v2528_v3, %v1764_v6 }
0x2393   :  { %1768 = vrot.lane.b32.xlu1 %v1766_v53, %s2614_s25 }
0x2405   :  { %v1769_v0 = vpop.permute.xlu1 %1768 }
0x2406   :  { %v1771_v54 = vadd.f32 %v1769_v0, %v1681_v52 }
0x2408   :  { %2529 = vtanh.f32 %v1771_v54 }
0x2415   :  { %v2530_v4 = vpop.eup %2529 }
0x2416   :  { %1775 = vrot.lane.b32.xlu0 %v2530_v4, %s2615_s3 }
0x2488   :  { %v1776_v7 = vpop.permute.xlu0 %1775 }
0x2489   :  { %v1778_v10 = vmul.f32 %v1776_v7, %v1773_v8 }
0x248b   :  { %v1780_v11 = vadd.f32 %v1779_v9, %v1778_v10 }
0x248d   :  { %1782 = vrot.lane.b32.xlu1 %v1780_v11, %s2615_s3 }
0x24ff   :  { %v1783_v12 = vpop.permute.xlu1 %1782 }
0x2500   :  { %1785 = vst.msk [vmem:[#allocation3 + $0xa] sm:$0x3] %vm294_vm4, %v1783_v12  ;;  %2414 = vmatmul.mubr.msk.f32.vlgmr.msra.gmra.mxu0 %vm189_vm5, %v1783_v12 }
0x2501   :  { %2435 = vmatprep.mubr.msk.f32.mxu0 %vm189_vm5, %v1996_v14 }
0x25c0   :  { %v1855_v15 = vpop.f32.mrf.mxu0 }
0x25c1   :  { %v1866_v16 = vadd.f32 %v2908_v1, %v1855_v15  ;;  %v1859_v19 = vadd.f32 %v1855_v15, %v1786_v18 }
0x25c2   :  { %v2415_v17 = vpop.f32.mrf.mxu0 }
0x25c3   :  { %1868 = vrot.lane.b32.xlu0 %v1866_v16, %s2614_s25  ;;  %v2134_v20 = vmul.f32 -1.442695, %v1859_v19 }
0x25c5   :  { %2531 = vpow2.f32 %v2134_v20 }
0x25d2   :  { %v2532_v21 = vpop.eup %2531 }
0x25d3   :  { %v1863_v22 = vadd.f32 1.0, %v2532_v21 }
0x25d5   :  { %2533 = vrcp.f32 %v1863_v22 }
0x25e2   :  { %v2534_v23 = vpop.eup %2533 }
0x25e3   :  { %v1878_v29 = vsub.f32 1.0, %v2534_v23  ;;  %v1884_v31 = vmul.f32 %v2534_v23, %v1780_v11 }
0x2635   :  { %v1869_v24 = vpop.permute.xlu0 %1868 }
0x2636   :  { %v1871_v25 = vmul.f32 %v2534_v23, %v1869_v24 }
0x2638   :  { %1873 = vrot.lane.b32.xlu1 %v1871_v25, %s2614_s25 }
0x26aa   :  { %v1874_v26 = vpop.permute.xlu1 %1873 }
0x26ab   :  { %v1876_v27 = vadd.f32 %v1874_v26, %v1786_v18 }
0x26ad   :  { %2535 = vtanh.f32 %v1876_v27 }
0x26ba   :  { %v2536_v28 = vpop.eup %2535 }
0x26bb   :  { %1880 = vrot.lane.b32.xlu0 %v2536_v28, %s2615_s3 }
0x272d   :  { %v1881_v30 = vpop.permute.xlu0 %1880 }
0x272e   :  { %v1883_v32 = vmul.f32 %v1881_v30, %v1878_v29 }
0x2730   :  { %v1885_v33 = vadd.f32 %v1884_v31, %v1883_v32 }
0x2732   :  { %1887 = vrot.lane.b32.xlu1 %v1885_v33, %s2615_s3 }
0x27a4   :  { %v1888_v34 = vpop.permute.xlu1 %1887 }
0x27a5   :  { %1890 = vst.msk [vmem:[#allocation3 + $0xc] sm:$0x3] %vm294_vm4, %v1888_v34  ;;  %2425 = vmatmul.mubr.msk.f32.vlgmr.msra.gmra.mxu1 %vm189_vm5, %v1888_v34 }
0x2865   :  { %v1960_v35 = vpop.f32.mrf.mxu1 }
0x2866   :  { %v1971_v36 = vadd.f32 %v2908_v1, %v1960_v35  ;;  %v1964_v39 = vadd.f32 %v1960_v35, %v1891_v38  ;;  %v2001_v1 = vld [vmem:[%s3066_s9 + $0x18] sm:$0xff] }
0x2867   :  { %v2426_v37 = vpop.f32.mrf.mxu1  ;;  %2427 = vmatprep.subr.mxu0 %v2001_v1 }
0x2868   :  { %1973 = vrot.lane.b32.xlu0 %v1971_v36, %s2614_s25  ;;  %v2136_v40 = vmul.f32 -1.442695, %v1964_v39  ;;  %2428 = vmatpush3.msra.mxu0 %v2001_v1 }
0x2869   :  { %2429 = vmatprep.subr.mxu0 %v2000_v49 }
0x286a   :  { %2537 = vpow2.f32 %v2136_v40  ;;  %2430 = vmatpush3.msra.mxu0 %v2000_v49 }
0x286b   :  { %2431 = vmatprep.subr.mxu0 %v1999_v50 }
0x286c   :  { %2432 = vmatpush3.msra.mxu0 %v1999_v50 }
0x286d   :  { %2433 = vmatprep.subr.mxu0 %v1998_v51 }
0x286e   :  { %2434 = vmatpush3.msra.mxu0 %v1998_v51 }
0x2877   :  { %v2538_v41 = vpop.eup %2537 }
0x2878   :  { %v1968_v42 = vadd.f32 1.0, %v2538_v41 }
0x287a   :  { %2539 = vrcp.f32 %v1968_v42 }
0x2887   :  { %v2540_v43 = vpop.eup %2539 }
0x2888   :  { %v1983_v55 = vsub.f32 1.0, %v2540_v43  ;;  %v1989_v57 = vmul.f32 %v2540_v43, %v1885_v33 }
0x28da   :  { %v1974_v44 = vpop.permute.xlu0 %1973 }
0x28db   :  { %v1976_v45 = vmul.f32 %v2540_v43, %v1974_v44 }
0x28dd   :  { %1978 = vrot.lane.b32.xlu1 %v1976_v45, %s2614_s25 }
0x294f   :  { %v1979_v46 = vpop.permute.xlu1 %1978 }
0x2950   :  { %v1981_v47 = vadd.f32 %v1979_v46, %v1891_v38 }
0x2952   :  { %2541 = vtanh.f32 %v1981_v47 }
0x295f   :  { %v2542_v48 = vpop.eup %2541 }
0x2960   :  { %1985 = vrot.lane.b32.xlu0 %v2542_v48, %s2615_s3 }
0x29d2   :  { %v1986_v56 = vpop.permute.xlu0 %1985 }
0x29d3   :  { %v1988_v58 = vmul.f32 %v1986_v56, %v1983_v55 }
0x29d5   :  { %v1990_v59 = vadd.f32 %v1989_v57, %v1988_v58 }
0x29d7   :  { %1992 = vrot.lane.b32.xlu1 %v1990_v59, %s2615_s3 }
0x2a49   :  { %v1993_v60 = vpop.permute.xlu1 %1992 }
0x2a4a   :  { %1995 = vst.msk [vmem:[#allocation3 + $0xe] sm:$0x3] %vm294_vm4, %v1993_v60 }
0x2a51   :  { %v1997_v2 = vld [vmem:[#allocation3 + $0x8] sm:$0xff] }
0x2a52   :  { %2436 = vmatmul.mubr.msk.f32.vlgmr.msra.gmra.mxu0 %vm189_vm5, %v1997_v2 }
0x2b12   :  { %v2437_v52 = vpop.f32.mrf.mxu0 }
0x2b13   :  { %v2087_v62 = vadd.f32 %v2437_v52, %v2137_v61 }
0x2b14   :  { %v2081_v63 = vpop.f32.mrf.mxu0 }
0x2b15   :  { %2092 = vst.msk [vmem:[%s3068_s11 + $0x8] sm:$0xff] %vm2090_vm6, %v2087_v62  ;;  %v2082_v5 = vadd.f32 %v2137_v61, %v2081_v63 }
0x2b17   :  { %2091 = vst.msk [vmem:[%s3068_s11] sm:$0xff] %vm2090_vm6, %v2082_v5 }
0x2b18   :  { %2097 = vsyncpa [#allocation5], 1 }
0x2b19   :  { %2098 = vsyncpa [#allocation7], 1 }

</bundles_post_ra>
